<compile_context>
chip_gen: v5e
topology: v5e:2x2
jax: 0.10.0
libtpu: 0.0.40
codegen_flags: <defaults>
</compile_context>

<pallas_src>
import math

import jax
import jax.numpy as jnp
from jax.experimental import pallas as pl
from jax.experimental.pallas import tpu as pltpu

LANE = 128          # vreg lane width
BATCH_GRANULE = 16  # bf16 sublane-packing granule (2 rows per sublane x 8 sublanes)


def _round_up(n, m):
    return ((n + m - 1) // m) * m


# ----------------------------------------------------------------------------- kernel

def _make_rnn_kernel(num_layers: int, seq_len: int, batch_block: int,
                     hidden_pad: int, classes_pad: int):
    T, bb, Hp, Cp = seq_len, batch_block, hidden_pad, classes_pad

    def kernel(*refs):
        # refs: x, [w_ih^T, w_hh^T, b_sum] * L, fc_w^T, fc_b, out, seq_scratch
        x_ref = refs[0]                                   # (T, bb, In_pad)  bf16
        layer_refs = refs[1:1 + 3 * num_layers]
        fc_w_ref = refs[1 + 3 * num_layers]               # (Hp, Cp)         bf16
        fc_b_ref = refs[2 + 3 * num_layers]               # (1, Cp)          f32
        out_ref = refs[3 + 3 * num_layers]                # (T, bb, Cp)      f32
        seq_ref = refs[4 + 3 * num_layers]                # (T*bb, Hp)       bf16 scratch

        # Resident weights, loaded once (bf16 MXU operands; biases stay f32).
        w_hh = [layer_refs[3 * l + 1][...] for l in range(num_layers)]
        w_ih = [None] + [layer_refs[3 * l][...] for l in range(1, num_layers)]
        bias = [layer_refs[3 * l + 2][...] for l in range(num_layers)]

        # ---- layer-0 input projection hoisted out of the recurrence: one big MXU
        #      matmul over all timesteps, combined bias folded in once.
        x2d = x_ref[...].reshape(T * bb, x_ref.shape[-1])   # layout-free (bb % 16 == 0)
        proj0 = jnp.dot(x2d, layer_refs[0][...],
                        preferred_element_type=jnp.float32) + bias[0]
        seq_ref[...] = proj0.astype(jnp.bfloat16)

        # ---- wavefront recurrence: at wavefront step s, layer l handles time t=s-l,
        #      giving up to num_layers independent latency chains in flight.
        h = [jnp.zeros((bb, Hp), jnp.float32) for _ in range(num_layers)]
        for s in range(T + num_layers - 1):                # static unroll (small T)
            for l in range(num_layers - 1, -1, -1):        # high->low: h[l-1] still time t
                t = s - l
                if not (0 <= t < T):
                    continue
                if l == 0:
                    # hoisted projection slab (bias already included)
                    pre = seq_ref[t * bb:(t + 1) * bb, :].astype(jnp.float32)
                else:
                    pre = jnp.dot(h[l - 1].astype(jnp.bfloat16), w_ih[l],
                                  preferred_element_type=jnp.float32) + bias[l]
                rec = jnp.dot(h[l].astype(jnp.bfloat16), w_hh[l],
                              preferred_element_type=jnp.float32)
                h_new = jnp.tanh(pre + rec)                # f32 tanh (v5e EUP: no bf16)
                h[l] = h_new
                if l == num_layers - 1:
                    # last layer's output: overwrite the (already consumed) proj slab
                    seq_ref[t * bb:(t + 1) * bb, :] = h_new.astype(jnp.bfloat16)

        # ---- fc head over all timesteps: one MXU matmul, lane-dense (Cp) output.
        logits = jnp.dot(seq_ref[...], fc_w_ref[...],
                         preferred_element_type=jnp.float32) + fc_b_ref[...]
        out_ref[...] = logits.reshape(T, bb, Cp).astype(out_ref.dtype)

    return kernel


# ----------------------------------------------------------------------------- wrapper

def rnn_forward(x, params, *, num_layers, hidden_size, num_classes, batch_block=None):
    B, T, input_size = x.shape
    Hp = _round_up(hidden_size, LANE)
    Ip = _round_up(input_size, LANE)
    Cp = _round_up(num_classes, LANE)
    Bp = _round_up(B, BATCH_GRANULE)

    # Batch-block policy: >=2 blocks when the batch allows (both v7x TensorCores busy),
    # otherwise a single block; blocks always a multiple of the bf16 row granule.
    if batch_block is None:
        batch_block = Bp // 2 if (Bp >= 2 * BATCH_GRANULE and Bp % (2 * BATCH_GRANULE) == 0) else Bp
    batch_block = _round_up(batch_block, BATCH_GRANULE)
    if batch_block > Bp or Bp % batch_block != 0:
        batch_block = Bp
    num_blocks = Bp // batch_block

    # Time-major, zero-padded (exact for tanh RNN: padded lanes stay 0), bf16 operands.
    xt = jnp.transpose(x, (1, 0, 2)).astype(jnp.float32)
    xt = jnp.pad(xt, ((0, 0), (0, Bp - B), (0, Ip - input_size))).astype(jnp.bfloat16)

    flat_args = [xt]
    in_specs = [pl.BlockSpec((T, batch_block, Ip), lambda i: (0, i, 0))]

    def _const_spec(arr):
        nd = arr.ndim
        return pl.BlockSpec(arr.shape, lambda i, _nd=nd: (0,) * _nd)   # resident block

    # Pre-transpose + zero-pad weights, pre-sum biases in the wrapper (layout plumbing).
    for l, (w_ih, w_hh, b_ih, b_hh) in enumerate(params["layers"]):
        d_in = input_size if l == 0 else hidden_size
        d_in_pad = Ip if l == 0 else Hp
        w_ih_t = jnp.pad(jnp.transpose(w_ih),
                         ((0, d_in_pad - d_in), (0, Hp - hidden_size))).astype(jnp.bfloat16)
        w_hh_t = jnp.pad(jnp.transpose(w_hh),
                         ((0, Hp - hidden_size), (0, Hp - hidden_size))).astype(jnp.bfloat16)
        b_sum = jnp.pad(b_ih + b_hh,
                        (0, Hp - hidden_size)).reshape(1, Hp).astype(jnp.float32)
        for a in (w_ih_t, w_hh_t, b_sum):
            flat_args.append(a)
            in_specs.append(_const_spec(a))

    fc_w, fc_b = params["fc"]
    fc_w_t = jnp.pad(jnp.transpose(fc_w),
                     ((0, Hp - hidden_size), (0, Cp - num_classes))).astype(jnp.bfloat16)
    fc_b_p = jnp.pad(fc_b, (0, Cp - num_classes)).reshape(1, Cp).astype(jnp.float32)
    for a in (fc_w_t, fc_b_p):
        flat_args.append(a)
        in_specs.append(_const_spec(a))

    out_spec = pl.BlockSpec((T, batch_block, Cp), lambda i: (0, i, 0))

    # VMEM budget: Pallas double-buffers EVERY input (incl. resident weights), plus
    # double-buffered x/out blocks and the single bf16 sequence scratch.
    def _nbytes(a):
        return int(math.prod(a.shape)) * a.dtype.itemsize

    x_blk = T * batch_block * Ip * 2
    out_blk = T * batch_block * Cp * 4
    wt_bytes = sum(_nbytes(a) for a in flat_args[1:])
    scratch_bytes = T * batch_block * Hp * 2
    vmem_need = 2 * (x_blk + out_blk + wt_bytes) + scratch_bytes + (4 << 20)

    try:  # per-generation physical VMEM: v5e/v6e 128 MiB, v7x 64 MiB (per TC)
        vmem_cap = int(pltpu.get_tpu_info().vmem_capacity_bytes)
    except Exception:
        vmem_cap = 64 * 1024 * 1024
    vmem_limit = int(min(max(vmem_need, 32 * 1024 * 1024), int(0.75 * vmem_cap)))

    out_t = pl.pallas_call(
        _make_rnn_kernel(num_layers, T, batch_block, Hp, Cp),
        out_shape=jax.ShapeDtypeStruct((T, Bp, Cp), jnp.float32),
        grid=(num_blocks,),
        in_specs=in_specs,
        out_specs=out_spec,
        scratch_shapes=[pltpu.VMEM((T * batch_block, Hp), jnp.bfloat16)],
        compiler_params=pltpu.CompilerParams(
            dimension_semantics=("parallel",),
            vmem_limit_bytes=vmem_limit),
    )(*flat_args)

    # Slice away batch/class padding, back to (B, T, C) batch-first.
    return jnp.transpose(out_t[:, :B, :num_classes], (1, 0, 2))


# ----------------------------------------------------------------------------- params

def init_params(key, input_size, hidden_size, num_layers, num_classes):
    """Deterministic init mimicking PyTorch's U(-1/sqrt(H), 1/sqrt(H))."""
    k = 1.0 / jnp.sqrt(hidden_size)
    layers = []
    for l in range(num_layers):
        d_in = input_size if l == 0 else hidden_size
        key, k1, k2, k3, k4 = jax.random.split(key, 5)
        layers.append((
            jax.random.uniform(k1, (hidden_size, d_in), jnp.float32, -k, k),         # w_ih
            jax.random.uniform(k2, (hidden_size, hidden_size), jnp.float32, -k, k),  # w_hh
            jax.random.uniform(k3, (hidden_size,), jnp.float32, -k, k),              # b_ih
            jax.random.uniform(k4, (hidden_size,), jnp.float32, -k, k),              # b_hh
        ))
    key, k5, k6 = jax.random.split(key, 3)
    fc_w = jax.random.uniform(k5, (num_classes, hidden_size), jnp.float32, -k, k)
    fc_b = jax.random.uniform(k6, (num_classes,), jnp.float32, -k, k)
    return {"layers": layers, "fc": (fc_w, fc_b)}


def rnn_reference(x, params):
    """Pure-JAX f32 reference of the PyTorch forward pass (h0 = 0)."""
    h_seq = x
    for (w_ih, w_hh, b_ih, b_hh) in params["layers"]:
        B = x.shape[0]
        h = jnp.zeros((B, w_hh.shape[0]), jnp.float32)
        outs = []
        for t in range(h_seq.shape[1]):
            h = jnp.tanh(h_seq[:, t, :] @ w_ih.T + b_ih + h @ w_hh.T + b_hh)
            outs.append(h)
        h_seq = jnp.stack(outs, axis=1)
    fc_w, fc_b = params["fc"]
    return h_seq @ fc_w.T + fc_b


# ----------------------------------------------------------------------------- main

if __name__ == "__main__":
    BATCH, SEQ, INPUT, HIDDEN, LAYERS, CLASSES = 2, 8, 16, 32, 2, 8

    key = jax.random.PRNGKey(0)
    key, kx = jax.random.split(key)
    x = jax.random.normal(kx, (BATCH, SEQ, INPUT), jnp.float32)
    params = init_params(key, INPUT, HIDDEN, LAYERS, CLASSES)

    out = rnn_forward(x, params, num_layers=LAYERS, hidden_size=HIDDEN,
                      num_classes=CLASSES)
    out = jax.block_until_ready(out)

    ref = rnn_reference(x, params)
    assert out.shape == (BATCH, SEQ, CLASSES)
    # bf16 MXU operands with f32 accumulation: expect ~1e-2 abs error vs f32 reference.
    assert jnp.allclose(out, ref, atol=3e-2, rtol=3e-2), \
        float(jnp.max(jnp.abs(out - ref)))

    print("KERNEL_OK")
</pallas_src>

<mosaic_0001>
module attributes {stable_mosaic.version = 11 : i64} {
  func.func @kernel(%arg0: i32, %arg1: memref<8x16x128xbf16, #tpu.memory_space<vmem>>, %arg2: memref<128x128xbf16, #tpu.memory_space<vmem>>, %arg3: memref<128x128xbf16, #tpu.memory_space<vmem>>, %arg4: memref<1x128xf32, #tpu.memory_space<vmem>>, %arg5: memref<128x128xbf16, #tpu.memory_space<vmem>>, %arg6: memref<128x128xbf16, #tpu.memory_space<vmem>>, %arg7: memref<1x128xf32, #tpu.memory_space<vmem>>, %arg8: memref<128x128xbf16, #tpu.memory_space<vmem>>, %arg9: memref<1x128xf32, #tpu.memory_space<vmem>>, %arg10: memref<8x16x128xf32, #tpu.memory_space<vmem>>, %arg11: memref<128x128xbf16, #tpu.memory_space<vmem>>) attributes {dimension_semantics = [#tpu.dimension_semantics<parallel>], iteration_bounds = array<i64: 1>, scalar_prefetch = 0 : i64, scratch_operands = 1 : i64, tpu.core_type = #tpu.core_type<tc>, window_params = [{transform_indices = @transform_0, window_bounds = array<i64: 8, 16, 128>}, {pipeline_mode = #tpu.pipeline_mode<synchronous>, transform_indices = @transform_1, window_bounds = array<i64: 128, 128>}, {pipeline_mode = #tpu.pipeline_mode<synchronous>, transform_indices = @transform_2, window_bounds = array<i64: 128, 128>}, {pipeline_mode = #tpu.pipeline_mode<synchronous>, transform_indices = @transform_3, window_bounds = array<i64: 1, 128>}, {pipeline_mode = #tpu.pipeline_mode<synchronous>, transform_indices = @transform_4, window_bounds = array<i64: 128, 128>}, {pipeline_mode = #tpu.pipeline_mode<synchronous>, transform_indices = @transform_5, window_bounds = array<i64: 128, 128>}, {pipeline_mode = #tpu.pipeline_mode<synchronous>, transform_indices = @transform_6, window_bounds = array<i64: 1, 128>}, {pipeline_mode = #tpu.pipeline_mode<synchronous>, transform_indices = @transform_7, window_bounds = array<i64: 128, 128>}, {pipeline_mode = #tpu.pipeline_mode<synchronous>, transform_indices = @transform_8, window_bounds = array<i64: 1, 128>}, {transform_indices = @transform_9, window_bounds = array<i64: 8, 16, 128>}]} {
    %c0 = arith.constant 0 : index
    %c0_0 = arith.constant 0 : index
    %0 = vector.load %arg3[%c0, %c0_0] : memref<128x128xbf16, #tpu.memory_space<vmem>>, vector<128x128xbf16>
    %c0_1 = arith.constant 0 : index
    %c0_2 = arith.constant 0 : index
    %1 = vector.load %arg6[%c0_1, %c0_2] : memref<128x128xbf16, #tpu.memory_space<vmem>>, vector<128x128xbf16>
    %c0_3 = arith.constant 0 : index
    %c0_4 = arith.constant 0 : index
    %2 = vector.load %arg5[%c0_3, %c0_4] : memref<128x128xbf16, #tpu.memory_space<vmem>>, vector<128x128xbf16>
    %c0_5 = arith.constant 0 : index
    %c0_6 = arith.constant 0 : index
    %3 = vector.load %arg4[%c0_5, %c0_6] : memref<1x128xf32, #tpu.memory_space<vmem>>, vector<1x128xf32>
    %c0_7 = arith.constant 0 : index
    %c0_8 = arith.constant 0 : index
    %4 = vector.load %arg7[%c0_7, %c0_8] : memref<1x128xf32, #tpu.memory_space<vmem>>, vector<1x128xf32>
    %c0_9 = arith.constant 0 : index
    %c0_10 = arith.constant 0 : index
    %c0_11 = arith.constant 0 : index
    %5 = vector.load %arg1[%c0_9, %c0_10, %c0_11] : memref<8x16x128xbf16, #tpu.memory_space<vmem>>, vector<8x16x128xbf16>
    %6 = vector.shape_cast %5 : vector<8x16x128xbf16> to vector<128x128xbf16>
    %c0_12 = arith.constant 0 : index
    %c0_13 = arith.constant 0 : index
    %7 = vector.load %arg2[%c0_12, %c0_13] : memref<128x128xbf16, #tpu.memory_space<vmem>>, vector<128x128xbf16>
    %cst = arith.constant dense<0.000000e+00> : vector<128x128xf32>
    %8 = tpu.matmul %6, %7, %cst {dimension_numbers = #tpu.dot_dimension_numbers<[1], [0], [0], [1], [0, 0, 1, 1], [], []>} : vector<128x128xbf16>, vector<128x128xbf16>, vector<128x128xf32> -> vector<128x128xf32>
    %9 = vector.broadcast %3 : vector<1x128xf32> to vector<128x128xf32>
    %10 = arith.addf %8, %9 : vector<128x128xf32>
    %11 = arith.truncf %10 : vector<128x128xf32> to vector<128x128xbf16>
    %c0_14 = arith.constant 0 : index
    %c0_15 = arith.constant 0 : index
    %12 = vector.load %arg11[%c0_14, %c0_15] : memref<128x128xbf16, #tpu.memory_space<vmem>>, vector<128x128xbf16>
    tpu.vector_store %arg11[%c0_14, %c0_15], %11 {strides = array<i32>} : memref<128x128xbf16, #tpu.memory_space<vmem>>, vector<128x128xbf16>,
    %cst_16 = arith.constant 0.000000e+00 : f32
    %13 = vector.broadcast %cst_16 : f32 to vector<16x128xf32>
    %cst_17 = arith.constant 0.000000e+00 : f32
    %14 = vector.broadcast %cst_17 : f32 to vector<16x128xf32>
    %c0_18 = arith.constant 0 : index
    %c0_19 = arith.constant 0 : index
    %15 = vector.load %arg11[%c0_18, %c0_19] : memref<128x128xbf16, #tpu.memory_space<vmem>>, vector<16x128xbf16>
    %16 = arith.extf %15 : vector<16x128xbf16> to vector<16x128xf32>
    %17 = arith.truncf %13 : vector<16x128xf32> to vector<16x128xbf16>
    %cst_20 = arith.constant dense<0.000000e+00> : vector<16x128xf32>
    %18 = tpu.matmul %17, %0, %cst_20 {dimension_numbers = #tpu.dot_dimension_numbers<[1], [0], [0], [1], [0, 0, 1, 1], [], []>} : vector<16x128xbf16>, vector<128x128xbf16>, vector<16x128xf32> -> vector<16x128xf32>
    %19 = arith.addf %16, %18 : vector<16x128xf32>
    %20 = math.tanh %19 : vector<16x128xf32>
    %21 = arith.truncf %20 : vector<16x128xf32> to vector<16x128xbf16>
    %cst_21 = arith.constant dense<0.000000e+00> : vector<16x128xf32>
    %22 = tpu.matmul %21, %2, %cst_21 {dimension_numbers = #tpu.dot_dimension_numbers<[1], [0], [0], [1], [0, 0, 1, 1], [], []>} : vector<16x128xbf16>, vector<128x128xbf16>, vector<16x128xf32> -> vector<16x128xf32>
    %23 = vector.broadcast %4 : vector<1x128xf32> to vector<16x128xf32>
    %24 = arith.addf %22, %23 : vector<16x128xf32>
    %25 = arith.truncf %14 : vector<16x128xf32> to vector<16x128xbf16>
    %cst_22 = arith.constant dense<0.000000e+00> : vector<16x128xf32>
    %26 = tpu.matmul %25, %1, %cst_22 {dimension_numbers = #tpu.dot_dimension_numbers<[1], [0], [0], [1], [0, 0, 1, 1], [], []>} : vector<16x128xbf16>, vector<128x128xbf16>, vector<16x128xf32> -> vector<16x128xf32>
    %27 = arith.addf %24, %26 : vector<16x128xf32>
    %28 = math.tanh %27 : vector<16x128xf32>
    %29 = arith.truncf %28 : vector<16x128xf32> to vector<16x128xbf16>
    %c0_23 = arith.constant 0 : index
    %c0_24 = arith.constant 0 : index
    %30 = vector.load %arg11[%c0_23, %c0_24] : memref<128x128xbf16, #tpu.memory_space<vmem>>, vector<16x128xbf16>
    tpu.vector_store %arg11[%c0_23, %c0_24], %29 {strides = array<i32>} : memref<128x128xbf16, #tpu.memory_space<vmem>>, vector<16x128xbf16>,
    %c16 = arith.constant 16 : index
    %c0_25 = arith.constant 0 : index
    %31 = vector.load %arg11[%c16, %c0_25] : memref<128x128xbf16, #tpu.memory_space<vmem>>, vector<16x128xbf16>
    %32 = arith.extf %31 : vector<16x128xbf16> to vector<16x128xf32>
    %33 = arith.truncf %20 : vector<16x128xf32> to vector<16x128xbf16>
    %cst_26 = arith.constant dense<0.000000e+00> : vector<16x128xf32>
    %34 = tpu.matmul %33, %0, %cst_26 {dimension_numbers = #tpu.dot_dimension_numbers<[1], [0], [0], [1], [0, 0, 1, 1], [], []>} : vector<16x128xbf16>, vector<128x128xbf16>, vector<16x128xf32> -> vector<16x128xf32>
    %35 = arith.addf %32, %34 : vector<16x128xf32>
    %36 = math.tanh %35 : vector<16x128xf32>
    %37 = arith.truncf %36 : vector<16x128xf32> to vector<16x128xbf16>
    %cst_27 = arith.constant dense<0.000000e+00> : vector<16x128xf32>
    %38 = tpu.matmul %37, %2, %cst_27 {dimension_numbers = #tpu.dot_dimension_numbers<[1], [0], [0], [1], [0, 0, 1, 1], [], []>} : vector<16x128xbf16>, vector<128x128xbf16>, vector<16x128xf32> -> vector<16x128xf32>
    %39 = vector.broadcast %4 : vector<1x128xf32> to vector<16x128xf32>
    %40 = arith.addf %38, %39 : vector<16x128xf32>
    %41 = arith.truncf %28 : vector<16x128xf32> to vector<16x128xbf16>
    %cst_28 = arith.constant dense<0.000000e+00> : vector<16x128xf32>
    %42 = tpu.matmul %41, %1, %cst_28 {dimension_numbers = #tpu.dot_dimension_numbers<[1], [0], [0], [1], [0, 0, 1, 1], [], []>} : vector<16x128xbf16>, vector<128x128xbf16>, vector<16x128xf32> -> vector<16x128xf32>
    %43 = arith.addf %40, %42 : vector<16x128xf32>
    %44 = math.tanh %43 : vector<16x128xf32>
    %45 = arith.truncf %44 : vector<16x128xf32> to vector<16x128xbf16>
    %c16_29 = arith.constant 16 : index
    %c0_30 = arith.constant 0 : index
    %46 = vector.load %arg11[%c16_29, %c0_30] : memref<128x128xbf16, #tpu.memory_space<vmem>>, vector<16x128xbf16>
    tpu.vector_store %arg11[%c16_29, %c0_30], %45 {strides = array<i32>} : memref<128x128xbf16, #tpu.memory_space<vmem>>, vector<16x128xbf16>,
    %c32 = arith.constant 32 : index
    %c0_31 = arith.constant 0 : index
    %47 = vector.load %arg11[%c32, %c0_31] : memref<128x128xbf16, #tpu.memory_space<vmem>>, vector<16x128xbf16>
    %48 = arith.extf %47 : vector<16x128xbf16> to vector<16x128xf32>
    %49 = arith.truncf %36 : vector<16x128xf32> to vector<16x128xbf16>
    %cst_32 = arith.constant dense<0.000000e+00> : vector<16x128xf32>
    %50 = tpu.matmul %49, %0, %cst_32 {dimension_numbers = #tpu.dot_dimension_numbers<[1], [0], [0], [1], [0, 0, 1, 1], [], []>} : vector<16x128xbf16>, vector<128x128xbf16>, vector<16x128xf32> -> vector<16x128xf32>
    %51 = arith.addf %48, %50 : vector<16x128xf32>
    %52 = math.tanh %51 : vector<16x128xf32>
    %53 = arith.truncf %52 : vector<16x128xf32> to vector<16x128xbf16>
    %cst_33 = arith.constant dense<0.000000e+00> : vector<16x128xf32>
    %54 = tpu.matmul %53, %2, %cst_33 {dimension_numbers = #tpu.dot_dimension_numbers<[1], [0], [0], [1], [0, 0, 1, 1], [], []>} : vector<16x128xbf16>, vector<128x128xbf16>, vector<16x128xf32> -> vector<16x128xf32>
    %55 = vector.broadcast %4 : vector<1x128xf32> to vector<16x128xf32>
    %56 = arith.addf %54, %55 : vector<16x128xf32>
    %57 = arith.truncf %44 : vector<16x128xf32> to vector<16x128xbf16>
    %cst_34 = arith.constant dense<0.000000e+00> : vector<16x128xf32>
    %58 = tpu.matmul %57, %1, %cst_34 {dimension_numbers = #tpu.dot_dimension_numbers<[1], [0], [0], [1], [0, 0, 1, 1], [], []>} : vector<16x128xbf16>, vector<128x128xbf16>, vector<16x128xf32> -> vector<16x128xf32>
    %59 = arith.addf %56, %58 : vector<16x128xf32>
    %60 = math.tanh %59 : vector<16x128xf32>
    %61 = arith.truncf %60 : vector<16x128xf32> to vector<16x128xbf16>
    %c32_35 = arith.constant 32 : index
    %c0_36 = arith.constant 0 : index
    %62 = vector.load %arg11[%c32_35, %c0_36] : memref<128x128xbf16, #tpu.memory_space<vmem>>, vector<16x128xbf16>
    tpu.vector_store %arg11[%c32_35, %c0_36], %61 {strides = array<i32>} : memref<128x128xbf16, #tpu.memory_space<vmem>>, vector<16x128xbf16>,
    %c48 = arith.constant 48 : index
    %c0_37 = arith.constant 0 : index
    %63 = vector.load %arg11[%c48, %c0_37] : memref<128x128xbf16, #tpu.memory_space<vmem>>, vector<16x128xbf16>
    %64 = arith.extf %63 : vector<16x128xbf16> to vector<16x128xf32>
    %65 = arith.truncf %52 : vector<16x128xf32> to vector<16x128xbf16>
    %cst_38 = arith.constant dense<0.000000e+00> : vector<16x128xf32>
    %66 = tpu.matmul %65, %0, %cst_38 {dimension_numbers = #tpu.dot_dimension_numbers<[1], [0], [0], [1], [0, 0, 1, 1], [], []>} : vector<16x128xbf16>, vector<128x128xbf16>, vector<16x128xf32> -> vector<16x128xf32>
    %67 = arith.addf %64, %66 : vector<16x128xf32>
    %68 = math.tanh %67 : vector<16x128xf32>
    %69 = arith.truncf %68 : vector<16x128xf32> to vector<16x128xbf16>
    %cst_39 = arith.constant dense<0.000000e+00> : vector<16x128xf32>
    %70 = tpu.matmul %69, %2, %cst_39 {dimension_numbers = #tpu.dot_dimension_numbers<[1], [0], [0], [1], [0, 0, 1, 1], [], []>} : vector<16x128xbf16>, vector<128x128xbf16>, vector<16x128xf32> -> vector<16x128xf32>
    %71 = vector.broadcast %4 : vector<1x128xf32> to vector<16x128xf32>
    %72 = arith.addf %70, %71 : vector<16x128xf32>
    %73 = arith.truncf %60 : vector<16x128xf32> to vector<16x128xbf16>
    %cst_40 = arith.constant dense<0.000000e+00> : vector<16x128xf32>
    %74 = tpu.matmul %73, %1, %cst_40 {dimension_numbers = #tpu.dot_dimension_numbers<[1], [0], [0], [1], [0, 0, 1, 1], [], []>} : vector<16x128xbf16>, vector<128x128xbf16>, vector<16x128xf32> -> vector<16x128xf32>
    %75 = arith.addf %72, %74 : vector<16x128xf32>
    %76 = math.tanh %75 : vector<16x128xf32>
    %77 = arith.truncf %76 : vector<16x128xf32> to vector<16x128xbf16>
    %c48_41 = arith.constant 48 : index
    %c0_42 = arith.constant 0 : index
    %78 = vector.load %arg11[%c48_41, %c0_42] : memref<128x128xbf16, #tpu.memory_space<vmem>>, vector<16x128xbf16>
    tpu.vector_store %arg11[%c48_41, %c0_42], %77 {strides = array<i32>} : memref<128x128xbf16, #tpu.memory_space<vmem>>, vector<16x128xbf16>,
    %c64 = arith.constant 64 : index
    %c0_43 = arith.constant 0 : index
    %79 = vector.load %arg11[%c64, %c0_43] : memref<128x128xbf16, #tpu.memory_space<vmem>>, vector<16x128xbf16>
    %80 = arith.extf %79 : vector<16x128xbf16> to vector<16x128xf32>
    %81 = arith.truncf %68 : vector<16x128xf32> to vector<16x128xbf16>
    %cst_44 = arith.constant dense<0.000000e+00> : vector<16x128xf32>
    %82 = tpu.matmul %81, %0, %cst_44 {dimension_numbers = #tpu.dot_dimension_numbers<[1], [0], [0], [1], [0, 0, 1, 1], [], []>} : vector<16x128xbf16>, vector<128x128xbf16>, vector<16x128xf32> -> vector<16x128xf32>
    %83 = arith.addf %80, %82 : vector<16x128xf32>
    %84 = math.tanh %83 : vector<16x128xf32>
    %85 = arith.truncf %84 : vector<16x128xf32> to vector<16x128xbf16>
    %cst_45 = arith.constant dense<0.000000e+00> : vector<16x128xf32>
    %86 = tpu.matmul %85, %2, %cst_45 {dimension_numbers = #tpu.dot_dimension_numbers<[1], [0], [0], [1], [0, 0, 1, 1], [], []>} : vector<16x128xbf16>, vector<128x128xbf16>, vector<16x128xf32> -> vector<16x128xf32>
    %87 = vector.broadcast %4 : vector<1x128xf32> to vector<16x128xf32>
    %88 = arith.addf %86, %87 : vector<16x128xf32>
    %89 = arith.truncf %76 : vector<16x128xf32> to vector<16x128xbf16>
    %cst_46 = arith.constant dense<0.000000e+00> : vector<16x128xf32>
    %90 = tpu.matmul %89, %1, %cst_46 {dimension_numbers = #tpu.dot_dimension_numbers<[1], [0], [0], [1], [0, 0, 1, 1], [], []>} : vector<16x128xbf16>, vector<128x128xbf16>, vector<16x128xf32> -> vector<16x128xf32>
    %91 = arith.addf %88, %90 : vector<16x128xf32>
    %92 = math.tanh %91 : vector<16x128xf32>
    %93 = arith.truncf %92 : vector<16x128xf32> to vector<16x128xbf16>
    %c64_47 = arith.constant 64 : index
    %c0_48 = arith.constant 0 : index
    %94 = vector.load %arg11[%c64_47, %c0_48] : memref<128x128xbf16, #tpu.memory_space<vmem>>, vector<16x128xbf16>
    tpu.vector_store %arg11[%c64_47, %c0_48], %93 {strides = array<i32>} : memref<128x128xbf16, #tpu.memory_space<vmem>>, vector<16x128xbf16>,
    %c80 = arith.constant 80 : index
    %c0_49 = arith.constant 0 : index
    %95 = vector.load %arg11[%c80, %c0_49] : memref<128x128xbf16, #tpu.memory_space<vmem>>, vector<16x128xbf16>
    %96 = arith.extf %95 : vector<16x128xbf16> to vector<16x128xf32>
    %97 = arith.truncf %84 : vector<16x128xf32> to vector<16x128xbf16>
    %cst_50 = arith.constant dense<0.000000e+00> : vector<16x128xf32>
    %98 = tpu.matmul %97, %0, %cst_50 {dimension_numbers = #tpu.dot_dimension_numbers<[1], [0], [0], [1], [0, 0, 1, 1], [], []>} : vector<16x128xbf16>, vector<128x128xbf16>, vector<16x128xf32> -> vector<16x128xf32>
    %99 = arith.addf %96, %98 : vector<16x128xf32>
    %100 = math.tanh %99 : vector<16x128xf32>
    %101 = arith.truncf %100 : vector<16x128xf32> to vector<16x128xbf16>
    %cst_51 = arith.constant dense<0.000000e+00> : vector<16x128xf32>
    %102 = tpu.matmul %101, %2, %cst_51 {dimension_numbers = #tpu.dot_dimension_numbers<[1], [0], [0], [1], [0, 0, 1, 1], [], []>} : vector<16x128xbf16>, vector<128x128xbf16>, vector<16x128xf32> -> vector<16x128xf32>
    %103 = vector.broadcast %4 : vector<1x128xf32> to vector<16x128xf32>
    %104 = arith.addf %102, %103 : vector<16x128xf32>
    %105 = arith.truncf %92 : vector<16x128xf32> to vector<16x128xbf16>
    %cst_52 = arith.constant dense<0.000000e+00> : vector<16x128xf32>
    %106 = tpu.matmul %105, %1, %cst_52 {dimension_numbers = #tpu.dot_dimension_numbers<[1], [0], [0], [1], [0, 0, 1, 1], [], []>} : vector<16x128xbf16>, vector<128x128xbf16>, vector<16x128xf32> -> vector<16x128xf32>
    %107 = arith.addf %104, %106 : vector<16x128xf32>
    %108 = math.tanh %107 : vector<16x128xf32>
    %109 = arith.truncf %108 : vector<16x128xf32> to vector<16x128xbf16>
    %c80_53 = arith.constant 80 : index
    %c0_54 = arith.constant 0 : index
    %110 = vector.load %arg11[%c80_53, %c0_54] : memref<128x128xbf16, #tpu.memory_space<vmem>>, vector<16x128xbf16>
    tpu.vector_store %arg11[%c80_53, %c0_54], %109 {strides = array<i32>} : memref<128x128xbf16, #tpu.memory_space<vmem>>, vector<16x128xbf16>,
    %c96 = arith.constant 96 : index
    %c0_55 = arith.constant 0 : index
    %111 = vector.load %arg11[%c96, %c0_55] : memref<128x128xbf16, #tpu.memory_space<vmem>>, vector<16x128xbf16>
    %112 = arith.extf %111 : vector<16x128xbf16> to vector<16x128xf32>
    %113 = arith.truncf %100 : vector<16x128xf32> to vector<16x128xbf16>
    %cst_56 = arith.constant dense<0.000000e+00> : vector<16x128xf32>
    %114 = tpu.matmul %113, %0, %cst_56 {dimension_numbers = #tpu.dot_dimension_numbers<[1], [0], [0], [1], [0, 0, 1, 1], [], []>} : vector<16x128xbf16>, vector<128x128xbf16>, vector<16x128xf32> -> vector<16x128xf32>
    %115 = arith.addf %112, %114 : vector<16x128xf32>
    %116 = math.tanh %115 : vector<16x128xf32>
    %117 = arith.truncf %116 : vector<16x128xf32> to vector<16x128xbf16>
    %cst_57 = arith.constant dense<0.000000e+00> : vector<16x128xf32>
    %118 = tpu.matmul %117, %2, %cst_57 {dimension_numbers = #tpu.dot_dimension_numbers<[1], [0], [0], [1], [0, 0, 1, 1], [], []>} : vector<16x128xbf16>, vector<128x128xbf16>, vector<16x128xf32> -> vector<16x128xf32>
    %119 = vector.broadcast %4 : vector<1x128xf32> to vector<16x128xf32>
    %120 = arith.addf %118, %119 : vector<16x128xf32>
    %121 = arith.truncf %108 : vector<16x128xf32> to vector<16x128xbf16>
    %cst_58 = arith.constant dense<0.000000e+00> : vector<16x128xf32>
    %122 = tpu.matmul %121, %1, %cst_58 {dimension_numbers = #tpu.dot_dimension_numbers<[1], [0], [0], [1], [0, 0, 1, 1], [], []>} : vector<16x128xbf16>, vector<128x128xbf16>, vector<16x128xf32> -> vector<16x128xf32>
    %123 = arith.addf %120, %122 : vector<16x128xf32>
    %124 = math.tanh %123 : vector<16x128xf32>
    %125 = arith.truncf %124 : vector<16x128xf32> to vector<16x128xbf16>
    %c96_59 = arith.constant 96 : index
    %c0_60 = arith.constant 0 : index
    %126 = vector.load %arg11[%c96_59, %c0_60] : memref<128x128xbf16, #tpu.memory_space<vmem>>, vector<16x128xbf16>
    tpu.vector_store %arg11[%c96_59, %c0_60], %125 {strides = array<i32>} : memref<128x128xbf16, #tpu.memory_space<vmem>>, vector<16x128xbf16>,
    %c112 = arith.constant 112 : index
    %c0_61 = arith.constant 0 : index
    %127 = vector.load %arg11[%c112, %c0_61] : memref<128x128xbf16, #tpu.memory_space<vmem>>, vector<16x128xbf16>
    %128 = arith.extf %127 : vector<16x128xbf16> to vector<16x128xf32>
    %129 = arith.truncf %116 : vector<16x128xf32> to vector<16x128xbf16>
    %cst_62 = arith.constant dense<0.000000e+00> : vector<16x128xf32>
    %130 = tpu.matmul %129, %0, %cst_62 {dimension_numbers = #tpu.dot_dimension_numbers<[1], [0], [0], [1], [0, 0, 1, 1], [], []>} : vector<16x128xbf16>, vector<128x128xbf16>, vector<16x128xf32> -> vector<16x128xf32>
    %131 = arith.addf %128, %130 : vector<16x128xf32>
    %132 = math.tanh %131 : vector<16x128xf32>
    %133 = arith.truncf %132 : vector<16x128xf32> to vector<16x128xbf16>
    %cst_63 = arith.constant dense<0.000000e+00> : vector<16x128xf32>
    %134 = tpu.matmul %133, %2, %cst_63 {dimension_numbers = #tpu.dot_dimension_numbers<[1], [0], [0], [1], [0, 0, 1, 1], [], []>} : vector<16x128xbf16>, vector<128x128xbf16>, vector<16x128xf32> -> vector<16x128xf32>
    %135 = vector.broadcast %4 : vector<1x128xf32> to vector<16x128xf32>
    %136 = arith.addf %134, %135 : vector<16x128xf32>
    %137 = arith.truncf %124 : vector<16x128xf32> to vector<16x128xbf16>
    %cst_64 = arith.constant dense<0.000000e+00> : vector<16x128xf32>
    %138 = tpu.matmul %137, %1, %cst_64 {dimension_numbers = #tpu.dot_dimension_numbers<[1], [0], [0], [1], [0, 0, 1, 1], [], []>} : vector<16x128xbf16>, vector<128x128xbf16>, vector<16x128xf32> -> vector<16x128xf32>
    %139 = arith.addf %136, %138 : vector<16x128xf32>
    %140 = math.tanh %139 : vector<16x128xf32>
    %141 = arith.truncf %140 : vector<16x128xf32> to vector<16x128xbf16>
    %c112_65 = arith.constant 112 : index
    %c0_66 = arith.constant 0 : index
    %142 = vector.load %arg11[%c112_65, %c0_66] : memref<128x128xbf16, #tpu.memory_space<vmem>>, vector<16x128xbf16>
    tpu.vector_store %arg11[%c112_65, %c0_66], %141 {strides = array<i32>} : memref<128x128xbf16, #tpu.memory_space<vmem>>, vector<16x128xbf16>,
    %c0_67 = arith.constant 0 : index
    %c0_68 = arith.constant 0 : index
    %143 = vector.load %arg11[%c0_67, %c0_68] : memref<128x128xbf16, #tpu.memory_space<vmem>>, vector<128x128xbf16>
    %c0_69 = arith.constant 0 : index
    %c0_70 = arith.constant 0 : index
    %144 = vector.load %arg8[%c0_69, %c0_70] : memref<128x128xbf16, #tpu.memory_space<vmem>>, vector<128x128xbf16>
    %cst_71 = arith.constant dense<0.000000e+00> : vector<128x128xf32>
    %145 = tpu.matmul %143, %144, %cst_71 {dimension_numbers = #tpu.dot_dimension_numbers<[1], [0], [0], [1], [0, 0, 1, 1], [], []>} : vector<128x128xbf16>, vector<128x128xbf16>, vector<128x128xf32> -> vector<128x128xf32>
    %c0_72 = arith.constant 0 : index
    %c0_73 = arith.constant 0 : index
    %146 = vector.load %arg9[%c0_72, %c0_73] : memref<1x128xf32, #tpu.memory_space<vmem>>, vector<1x128xf32>
    %147 = vector.broadcast %146 : vector<1x128xf32> to vector<128x128xf32>
    %148 = arith.addf %145, %147 : vector<128x128xf32>
    %149 = vector.shape_cast %148 : vector<128x128xf32> to vector<8x16x128xf32>
    %c0_74 = arith.constant 0 : index
    %c0_75 = arith.constant 0 : index
    %c0_76 = arith.constant 0 : index
    %150 = vector.load %arg10[%c0_74, %c0_75, %c0_76] : memref<8x16x128xf32, #tpu.memory_space<vmem>>, vector<8x16x128xf32>
    tpu.vector_store %arg10[%c0_74, %c0_75, %c0_76], %149 {strides = array<i32>} : memref<8x16x128xf32, #tpu.memory_space<vmem>>, vector<8x16x128xf32>,
    return
  }
  func.func @transform_0(%arg0: i32) -> (i32, i32, i32) {
    %c0_i32 = arith.constant 0 : i32
    %c0_i32_0 = arith.constant 0 : i32
    %c0_i32_1 = arith.constant 0 : i32
    return %c0_i32, %arg0, %c0_i32_0 : i32, i32, i32
  }
  func.func @transform_1(%arg0: i32) -> (i32, i32) {
    %c0_i32 = arith.constant 0 : i32
    %c0_i32_0 = arith.constant 0 : i32
    %c0_i32_1 = arith.constant 0 : i32
    return %c0_i32, %c0_i32_0 : i32, i32
  }
  func.func @transform_2(%arg0: i32) -> (i32, i32) {
    %c0_i32 = arith.constant 0 : i32
    %c0_i32_0 = arith.constant 0 : i32
    %c0_i32_1 = arith.constant 0 : i32
    return %c0_i32, %c0_i32_0 : i32, i32
  }
  func.func @transform_3(%arg0: i32) -> (i32, i32) {
    %c0_i32 = arith.constant 0 : i32
    %c0_i32_0 = arith.constant 0 : i32
    %c0_i32_1 = arith.constant 0 : i32
    return %c0_i32, %c0_i32_0 : i32, i32
  }
  func.func @transform_4(%arg0: i32) -> (i32, i32) {
    %c0_i32 = arith.constant 0 : i32
    %c0_i32_0 = arith.constant 0 : i32
    %c0_i32_1 = arith.constant 0 : i32
    return %c0_i32, %c0_i32_0 : i32, i32
  }
  func.func @transform_5(%arg0: i32) -> (i32, i32) {
    %c0_i32 = arith.constant 0 : i32
    %c0_i32_0 = arith.constant 0 : i32
    %c0_i32_1 = arith.constant 0 : i32
    return %c0_i32, %c0_i32_0 : i32, i32
  }
  func.func @transform_6(%arg0: i32) -> (i32, i32) {
    %c0_i32 = arith.constant 0 : i32
    %c0_i32_0 = arith.constant 0 : i32
    %c0_i32_1 = arith.constant 0 : i32
    return %c0_i32, %c0_i32_0 : i32, i32
  }
  func.func @transform_7(%arg0: i32) -> (i32, i32) {
    %c0_i32 = arith.constant 0 : i32
    %c0_i32_0 = arith.constant 0 : i32
    %c0_i32_1 = arith.constant 0 : i32
    return %c0_i32, %c0_i32_0 : i32, i32
  }
  func.func @transform_8(%arg0: i32) -> (i32, i32) {
    %c0_i32 = arith.constant 0 : i32
    %c0_i32_0 = arith.constant 0 : i32
    %c0_i32_1 = arith.constant 0 : i32
    return %c0_i32, %c0_i32_0 : i32, i32
  }
  func.func @transform_9(%arg0: i32) -> (i32, i32, i32) {
    %c0_i32 = arith.constant 0 : i32
    %c0_i32_0 = arith.constant 0 : i32
    %c0_i32_1 = arith.constant 0 : i32
    return %c0_i32, %arg0, %c0_i32_0 : i32, i32, i32
  }
}

</mosaic_0001>

<bundles_post_ra>
// kernel: tpu_custom_call.1
= control target key start
LH: loop header
LB: loop body
LE: loop exit
PB: predicated region body
PF: predicated region fallthrough
CT: control target
= control target key end

     0   :  { %14 = vsyncpa [#allocation4], 0  ;;  %s2390_s0 = inlined_call_operand.hbm [shape: bf16[8,16,128], index: 0, kind: input, shape index: {}]   ;;  %s2391_s1 = inlined_call_operand.hbm [shape: bf16[128,128], index: 1, kind: input, shape index: {}]   ;;  %s2392_s2 = inlined_call_operand.hbm [shape: bf16[128,128], index: 2, kind: input, shape index: {}]   ;;  %s2393_s3 = inlined_call_operand.vmem [shape: f32[1,128], index: 3, kind: input, shape index: {}]   ;;  %s2394_s4 = inlined_call_operand.hbm [shape: bf16[128,128], index: 4, kind: input, shape index: {}]   ;;  %s2395_s5 = inlined_call_operand.hbm [shape: bf16[128,128], index: 5, kind: input, shape index: {}]   ;;  %s2396_s6 = inlined_call_operand.vmem [shape: f32[1,128], index: 6, kind: input, shape index: {}]   ;;  %s2397_s7 = inlined_call_operand.hbm [shape: bf16[128,128], index: 7, kind: input, shape index: {}]   ;;  %s2398_s8 = inlined_call_operand.vmem [shape: f32[1,128], index: 8, kind: input, shape index: {}]   ;;  %s2399_s9 = inlined_call_operand.hbm [shape: f32[8,16,128], index: 9, kind: output, shape index: {}]  }
   0x1   :  { %15 = vsyncpa [#allocation7], 0 }
   0x2   :  { %16 = vsyncpa [#allocation10], 0 }
   0x3   :  { %17 = vsyncpa [#allocation13], 0 }
   0x4   :  { %18 = vsyncpa [#allocation5], 0  ;;  %s36_s11 = sshll.u32 %s2391_s1, 4  ;;  %s1956_s12 = smov [#allocation6]   ;;  %s37_s11 = int_to_ptr.hbm [resolvable:$true] %s36_s11 }
   0x5   :  { %s38_s13 = sshll.u32 %s1956_s12, 4  ;;  %s64_s16 = sshll.u32 %s2394_s4, 4  ;;  %s39_s13 = int_to_ptr.vmem [resolvable:$true] %s38_s13  ;;  %s65_s16 = int_to_ptr.hbm [resolvable:$true] %s64_s16 }
   0x6   :  { %s1957_s17 = smov 64   ;;  %s1958_s18 = smov 4  }
   0x7   :  { %44 = dma.hbm_to_vmem [thread:$0]  %s37_s11, 1024, %s39_s13, [#allocation7], %s1957_s17, %s1957_s17, %s1958_s18  }
   0x8   :  { %s1959_s19 = smov [#allocation9]   ;;  %s23_s1 = sshll.u32 %s2390_s0, 4  ;;  %s24_s1 = int_to_ptr.hbm [resolvable:$true] %s23_s1 }
   0x9   :  { %s66_s20 = sshll.u32 %s1959_s19, 4  ;;  %s49_s24 = sshll.u32 %s2392_s2, 4  ;;  %s67_s20 = int_to_ptr.vmem [resolvable:$true] %s66_s20  ;;  %s50_s24 = int_to_ptr.hbm [resolvable:$true] %s49_s24 }
   0xa   :  { %72 = dma.hbm_to_vmem [thread:$0]  %s65_s16, 1024, %s67_s20, [#allocation10], %s1957_s17, %s1957_s17, %s1958_s18  }
   0xb   :  { %s1960_s25 = smov [#allocation3]   ;;  %s1961_s27 = smov [#allocation8]  }
   0xc   :  { %s25_s26 = sshll.u32 %s1960_s25, 4  ;;  %s51_s0 = sshll.u32 %s1961_s27, 4  ;;  %s26_s26 = int_to_ptr.vmem [resolvable:$true] %s25_s26  ;;  %s52_s0 = int_to_ptr.vmem [resolvable:$true] %s51_s0 }
   0xd   :  { %31 = dma.hbm_to_vmem [thread:$0]  %s24_s1, 1024, %s26_s26, [#allocation4], %s1957_s17, %s1957_s17, %s1958_s18  }
   0xe   :  { %s77_s30 = sshll.u32 %s2395_s5, 4  ;;  %s92_s11 = sshll.u32 %s2397_s7, 4  ;;  %s78_s30 = int_to_ptr.hbm [resolvable:$true] %s77_s30  ;;  %s93_s11 = int_to_ptr.hbm [resolvable:$true] %s92_s11 }
   0xf   :  { %57 = dma.hbm_to_vmem [thread:$0]  %s50_s24, 1024, %s52_s0, [#allocation7], %s1957_s17, %s1957_s17, %s1958_s18  }
  0x10   :  { %s1962_s12 = smov [#allocation11]   ;;  %s1963_s14 = smov [#allocation12]  }
  0x11   :  { %s79_s13 = sshll.u32 %s1962_s12, 4  ;;  %s94_s5 = sshll.u32 %s1963_s14, 4  ;;  %s80_s13 = int_to_ptr.vmem [resolvable:$true] %s79_s13  ;;  %s95_s5 = int_to_ptr.vmem [resolvable:$true] %s94_s5 }
  0x12   :  { %85 = dma.hbm_to_vmem [thread:$0]  %s78_s30, 1024, %s80_s13, [#allocation10], %s1957_s17, %s1957_s17, %s1958_s18  }
  0x13   :  { %100 = dma.hbm_to_vmem [thread:$0]  %s93_s11, 1024, %s95_s5, [#allocation13], %s1957_s17, %s1957_s17, %s1958_s18  }
  0x14   :  { %1946 = dma.done.wait [#allocation4], 1024  }
  0x15   :  { %1947 = vsyncadd [#allocation4], 4294966272 }
  0x16   :  { %1948 = dma.done.wait [#allocation7], 2048  }
  0x17   :  { %1949 = vsyncadd [#allocation7], 4294965248 }
  0x18   :  { %1950 = dma.done.wait [#allocation10], 2048  }
  0x19   :  { %1951 = vsyncadd [#allocation10], 4294965248 }
  0x1a   :  { %1952 = dma.done.wait [#allocation13], 1024  }
  0x1b   :  { %1953 = vsyncadd [#allocation13], 4294966272  ;;  %v1533_v0 = vld [vmem:[#allocation6 + $0x38] sm:$0xff]  ;;  %v1532_v1 = vld [vmem:[#allocation6 + $0x30] sm:$0xff]  ;;  %v1964_v19 = vmov 0   ;;  %s1254_s21 = sshll.u32 %s2399_s9, 4  ;;  %s1255_s21 = int_to_ptr.hbm [resolvable:$true] %s1254_s21 }
  0x1c   :  { %309 = vmatpush.bf16.msra.mxu1 %v1533_v0  ;;  %1683 = vmatpush.bf16.msra.mxu2 %v1533_v0  ;;  %v2054_v2 = vld [vmem:[#allocation8 + $0x38] sm:$0xff]  ;;  %v1531_v3 = vld [vmem:[#allocation6 + $0x28] sm:$0xff]  ;;  %v2057_v4 = vld [vmem:[#allocation8 + $0x30] sm:$0xff]  ;;  %s1966_s22 = smov 128   ;;  %s1967_s1 = smov 8  }
  0x1d   :  { %1684 = vmatpush.bf16.msra.mxu3 %v1533_v0  ;;  %795 = vmatpush.bf16.msra.mxu0 %v2054_v2  ;;  %v1530_v5 = vld [vmem:[#allocation6 + $0x20] sm:$0xff]  ;;  %v2060_v6 = vld [vmem:[#allocation8 + $0x28] sm:$0xff]  ;;  %v1529_v7 = vld [vmem:[#allocation6 + $0x18] sm:$0xff] }
  0x1e   :  { %v2063_v8 = vld [vmem:[#allocation8 + $0x20] sm:$0xff]  ;;  %v1528_v9 = vld [vmem:[#allocation6 + $0x10] sm:$0xff]  ;;  %v2066_v10 = vld [vmem:[#allocation8 + $0x18] sm:$0xff] }
  0x1f   :  { %v1527_v11 = vld [vmem:[#allocation6 + $0x8] sm:$0xff]  ;;  %v2069_v12 = vld [vmem:[#allocation8 + $0x10] sm:$0xff]  ;;  %v1526_v13 = vld [vmem:[#allocation6] sm:$0xff] }
  0x20   :  { %310 = vmatpush.bf16.msra.mxu1 %v1532_v1  ;;  %1685 = vmatpush.bf16.msra.mxu2 %v1532_v1  ;;  %v1518_v14 = vld [vmem:[#allocation3] sm:$0xff]  ;;  %v2073_v15 = vld [vmem:[#allocation8 + $0x8] sm:$0xff]  ;;  %v1520_v18 = vld [vmem:[#allocation3 + $0x10] sm:$0xff] }
  0x21   :  { %1686 = vmatpush.bf16.msra.mxu3 %v1532_v1  ;;  %796 = vmatpush.bf16.msra.mxu0 %v2057_v4  ;;  %v2077_v16 = vld [vmem:[#allocation8] sm:$0xff]  ;;  %v1519_v17 = vld [vmem:[#allocation3 + $0x8] sm:$0xff]  ;;  %v1521_v20 = vld [vmem:[#allocation3 + $0x18] sm:$0xff] }
  0x22   :  { %v2103_v21 = vld [vmem:[#allocation9 + $0x38] sm:$0xff]  ;;  %v1522_v22 = vld [vmem:[#allocation3 + $0x20] sm:$0xff]  ;;  %v2107_v23 = vld [vmem:[#allocation9 + $0x30] sm:$0xff] }
  0x23   :  { %v1524_v24 = vld [vmem:[#allocation3 + $0x30] sm:$0xff]  ;;  %v2109_v25 = vld [vmem:[#allocation11 + $0x38] sm:$0xff]  ;;  %v2114_v27 = vld [vmem:[#allocation9 + $0x28] sm:$0xff] }
  0x24   :  { %311 = vmatpush.bf16.msra.mxu1 %v1531_v3  ;;  %1687 = vmatpush.bf16.msra.mxu2 %v1531_v3  ;;  %v2116_v28 = vld [vmem:[#allocation11 + $0x30] sm:$0xff]  ;;  %v2120_v29 = vld [vmem:[#allocation9 + $0x20] sm:$0xff]  ;;  %v2122_v30 = vld [vmem:[#allocation11 + $0x28] sm:$0xff] }
  0x25   :  { %1688 = vmatpush.bf16.msra.mxu3 %v1531_v3  ;;  %797 = vmatpush.bf16.msra.mxu0 %v2060_v6  ;;  %v2128_v32 = vld [vmem:[#allocation11 + $0x20] sm:$0xff]  ;;  %v1523_v33 = vld [vmem:[#allocation3 + $0x28] sm:$0xff]  ;;  %v2131_v34 = vld [vmem:[#allocation9 + $0x18] sm:$0xff] }
  0x26   :  { %v1525_v35 = vld [vmem:[#allocation3 + $0x38] sm:$0xff]  ;;  %v2138_v38 = vld [vmem:[#allocation11 + $0x10] sm:$0xff]  ;;  %v2143_v40 = vld [vmem:[#allocation11 + $0x8] sm:$0xff] }
  0x27   :  { %v2133_v36 = vld [vmem:[#allocation11 + $0x18] sm:$0xff]  ;;  %v2140_v39 = vld [vmem:[#allocation9 + $0x10] sm:$0xff]  ;;  %v2150_v41 = vld [vmem:[%s2393_s3] ss:$0 sm:$0xff] }
  0x28   :  { %312 = vmatpush.bf16.msra.mxu1 %v1530_v5  ;;  %1689 = vmatpush.bf16.msra.mxu2 %v1530_v5  ;;  %v2155_v45 = vld [vmem:[#allocation11] sm:$0xff]  ;;  %v2159_v47 = vld [vmem:[#allocation9 + $0x8] sm:$0xff] }
  0x29   :  { %1690 = vmatpush.bf16.msra.mxu3 %v1530_v5  ;;  %798 = vmatpush.bf16.msra.mxu0 %v2063_v8  ;;  %v2164_v48 = vld [vmem:[#allocation9] sm:$0xff] }
  0x2c   :  { %313 = vmatpush.bf16.msra.mxu1 %v1529_v7  ;;  %1691 = vmatpush.bf16.msra.mxu2 %v1529_v7 }
  0x2d   :  { %1692 = vmatpush.bf16.msra.mxu3 %v1529_v7  ;;  %799 = vmatpush.bf16.msra.mxu0 %v2066_v10 }
  0x30   :  { %314 = vmatpush.bf16.msra.mxu1 %v1528_v9  ;;  %1693 = vmatpush.bf16.msra.mxu2 %v1528_v9 }
  0x31   :  { %1694 = vmatpush.bf16.msra.mxu3 %v1528_v9  ;;  %800 = vmatpush.bf16.msra.mxu0 %v2069_v12 }
  0x34   :  { %315 = vmatpush.bf16.msra.mxu1 %v1527_v11  ;;  %1695 = vmatpush.bf16.msra.mxu2 %v1527_v11 }
  0x35   :  { %1696 = vmatpush.bf16.msra.mxu3 %v1527_v11  ;;  %801 = vmatpush.bf16.msra.mxu0 %v2073_v15 }
  0x38   :  { %316 = vmatpush.bf16.msra.mxu1 %v1526_v13  ;;  %1697 = vmatpush.bf16.msra.mxu2 %v1526_v13 }
  0x39   :  { %1698 = vmatpush.bf16.msra.mxu3 %v1526_v13  ;;  %802 = vmatpush.bf16.msra.mxu0 %v2077_v16 }
  0x3b   :  { %317 = vmatmul.bf16.vlgmr.msra.gmra.mxu1 %v1518_v14  ;;  %332 = vmatmul.bf16.vlgmr.msra.gmra.mxu2 %v1521_v20 }
  0x3c   :  { %442 = vmatpush.bf16.msrb.mxu1 %v2054_v2  ;;  %512 = vmatpush.bf16.msrb.mxu2 %v2103_v21 }
  0x3d   :  { %879 = vmatpush.bf16.msrb.mxu0 %v2103_v21  ;;  %347 = vmatmul.bf16.vlgmr.msra.gmra.mxu3 %v1524_v24 }
  0x3e   :  { %574 = vmatpush.bf16.msrb.mxu3 %v2109_v25 }
  0x40   :  { %443 = vmatpush.bf16.msrb.mxu1 %v2057_v4  ;;  %513 = vmatpush.bf16.msrb.mxu2 %v2107_v23 }
  0x41   :  { %880 = vmatpush.bf16.msrb.mxu0 %v2107_v23 }
  0x42   :  { %575 = vmatpush.bf16.msrb.mxu3 %v2116_v28 }
  0x44   :  { %444 = vmatpush.bf16.msrb.mxu1 %v2060_v6  ;;  %514 = vmatpush.bf16.msrb.mxu2 %v2114_v27 }
  0x45   :  { %881 = vmatpush.bf16.msrb.mxu0 %v2114_v27 }
  0x46   :  { %576 = vmatpush.bf16.msrb.mxu3 %v2122_v30 }
  0x48   :  { %445 = vmatpush.bf16.msrb.mxu1 %v2063_v8  ;;  %515 = vmatpush.bf16.msrb.mxu2 %v2120_v29 }
  0x49   :  { %882 = vmatpush.bf16.msrb.mxu0 %v2120_v29 }
  0x4a   :  { %577 = vmatpush.bf16.msrb.mxu3 %v2128_v32 }
  0x4b   :  { %322 = vmatmul.bf16.gmra.mxu1 %v1519_v17  ;;  %337 = vmatmul.bf16.gmra.mxu2 %v1522_v22 }
  0x4c   :  { %446 = vmatpush.bf16.msrb.mxu1 %v2066_v10  ;;  %516 = vmatpush.bf16.msrb.mxu2 %v2131_v34 }
  0x4d   :  { %352 = vmatmul.bf16.gmra.mxu3 %v1525_v35  ;;  %883 = vmatpush.bf16.msrb.mxu0 %v2131_v34 }
  0x4e   :  { %578 = vmatpush.bf16.msrb.mxu3 %v2133_v36 }
  0x50   :  { %447 = vmatpush.bf16.msrb.mxu1 %v2069_v12  ;;  %517 = vmatpush.bf16.msrb.mxu2 %v2140_v39 }
  0x51   :  { %884 = vmatpush.bf16.msrb.mxu0 %v2140_v39 }
  0x52   :  { %579 = vmatpush.bf16.msrb.mxu3 %v2138_v38 }
  0x54   :  { %448 = vmatpush.bf16.msrb.mxu1 %v2073_v15  ;;  %518 = vmatpush.bf16.msrb.mxu2 %v2159_v47 }
  0x55   :  { %885 = vmatpush.bf16.msrb.mxu0 %v2159_v47 }
  0x56   :  { %580 = vmatpush.bf16.msrb.mxu3 %v2143_v40 }
  0x58   :  { %449 = vmatpush.bf16.msrb.mxu1 %v2077_v16  ;;  %519 = vmatpush.bf16.msrb.mxu2 %v2164_v48 }
  0x59   :  { %886 = vmatpush.bf16.msrb.mxu0 %v2164_v48 }
  0x5a   :  { %581 = vmatpush.bf16.msrb.mxu3 %v2155_v45 }
  0x5b   :  { %327 = vmatmul.bf16.gmra.mxu1 %v1520_v18  ;;  %342 = vmatmul.bf16.gmra.mxu2 %v1523_v33 }
  0x5c   :  { %600 = vmatpush.bf16.msra.mxu1 %v2054_v2  ;;  %619 = vmatpush.bf16.msra.mxu2 %v2103_v21 }
  0x5d   :  { %582 = vmatmul.bf16.vlgmr.msrb.gmra.mxu3 %v1964_v19 }
  0x5e   :  { %639 = vmatpush.bf16.msra.mxu3 %v2109_v25 }
  0x60   :  { %601 = vmatpush.bf16.msra.mxu1 %v2057_v4  ;;  %620 = vmatpush.bf16.msra.mxu2 %v2107_v23 }
  0x62   :  { %640 = vmatpush.bf16.msra.mxu3 %v2116_v28 }
  0x64   :  { %602 = vmatpush.bf16.msra.mxu1 %v2060_v6  ;;  %621 = vmatpush.bf16.msra.mxu2 %v2114_v27 }
  0x66   :  { %641 = vmatpush.bf16.msra.mxu3 %v2122_v30 }
  0x68   :  { %603 = vmatpush.bf16.msra.mxu1 %v2063_v8  ;;  %622 = vmatpush.bf16.msra.mxu2 %v2120_v29 }
  0x6a   :  { %642 = vmatpush.bf16.msra.mxu3 %v2128_v32 }
  0x6b   :  { %450 = vmatmul.bf16.vlgmr.msrb.gmra.mxu1 %v1964_v19 }
  0x6c   :  { %604 = vmatpush.bf16.msra.mxu1 %v2066_v10  ;;  %623 = vmatpush.bf16.msra.mxu2 %v2131_v34 }
  0x6e   :  { %643 = vmatpush.bf16.msra.mxu3 %v2133_v36 }
  0x70   :  { %605 = vmatpush.bf16.msra.mxu1 %v2069_v12  ;;  %624 = vmatpush.bf16.msra.mxu2 %v2140_v39 }
  0x72   :  { %644 = vmatpush.bf16.msra.mxu3 %v2138_v38 }
  0x74   :  { %606 = vmatpush.bf16.msra.mxu1 %v2073_v15  ;;  %625 = vmatpush.bf16.msra.mxu2 %v2159_v47 }
  0x76   :  { %645 = vmatpush.bf16.msra.mxu3 %v2143_v40 }
  0x78   :  { %607 = vmatpush.bf16.msra.mxu1 %v2077_v16  ;;  %626 = vmatpush.bf16.msra.mxu2 %v2164_v48 }
  0x7a   :  { %646 = vmatpush.bf16.msra.mxu3 %v2155_v45 }
  0x7c   :  { %665 = vmatpush.bf16.msrb.mxu1 %v2054_v2 }
  0x7e   :  { %704 = vmatpush.bf16.msrb.mxu3 %v2109_v25 }
  0x80   :  { %666 = vmatpush.bf16.msrb.mxu1 %v2057_v4 }
  0x82   :  { %705 = vmatpush.bf16.msrb.mxu3 %v2116_v28 }
  0x84   :  { %667 = vmatpush.bf16.msrb.mxu1 %v2060_v6 }
  0x86   :  { %706 = vmatpush.bf16.msrb.mxu3 %v2122_v30 }
  0x88   :  { %668 = vmatpush.bf16.msrb.mxu1 %v2063_v8 }
  0x8a   :  { %707 = vmatpush.bf16.msrb.mxu3 %v2128_v32 }
  0x8c   :  { %669 = vmatpush.bf16.msrb.mxu1 %v2066_v10 }
  0x8e   :  { %708 = vmatpush.bf16.msrb.mxu3 %v2133_v36 }
  0x90   :  { %670 = vmatpush.bf16.msrb.mxu1 %v2069_v12 }
  0x92   :  { %709 = vmatpush.bf16.msrb.mxu3 %v2138_v38 }
  0x94   :  { %671 = vmatpush.bf16.msrb.mxu1 %v2073_v15 }
  0x96   :  { %710 = vmatpush.bf16.msrb.mxu3 %v2143_v40 }
  0x98   :  { %672 = vmatpush.bf16.msrb.mxu1 %v2077_v16 }
  0x9a   :  { %711 = vmatpush.bf16.msrb.mxu3 %v2155_v45 }
  0xb8   :  { %v318_v26 = vpop.f32.mrf.mxu1 }
  0xb9   :  { %v319_v55 = vadd.f32 %v2150_v41, %v318_v26 }
  0xbe   :  { %v333_v3 = vpop.f32.mrf.mxu2 }
  0xbf   :  { %v334_v5 = vadd.f32 %v2150_v41, %v333_v3 }
  0xc0   :  { %v320_v31 = vpop.f32.mrf.mxu1  ;;  %v348_v14 = vpop.f32.mrf.mxu3 }
  0xc1   :  { %v321_v54 = vadd.f32 %v2150_v41, %v320_v31  ;;  %v349_v18 = vadd.f32 %v2150_v41, %v348_v14 }
  0xc3   :  { %v1553_v56 = vpack.c.bf16 %v321_v54, %v319_v55  ;;  %v2238_v55 = vld [vmem:[%s2396_s6] ss:$0 sm:$0xff] }
  0xc5   :  { %v1592_v58 = vunpack.c.l.bf16 %v1553_v56  ;;  %v1593_v60 = vunpack.c.h.bf16 %v1553_v56 }
  0xc6   :  { %v335_v7 = vpop.f32.mrf.mxu2 }
  0xc7   :  { %v336_v9 = vadd.f32 %v2150_v41, %v335_v7 }
  0xc8   :  { %v323_v37 = vpop.f32.mrf.mxu1  ;;  %v350_v22 = vpop.f32.mrf.mxu3 }
  0xc9   :  { %v324_v43 = vadd.f32 %v2150_v41, %v323_v37  ;;  %v2217_v11 = vpack.c.bf16 %v336_v9, %v334_v5  ;;  %v351_v24 = vadd.f32 %v2150_v41, %v350_v22 }
  0xcb   :  { %v2225_v31 = vpack.c.bf16 %v351_v24, %v349_v18 }
  0xce   :  { %v338_v13 = vpop.f32.mrf.mxu2 }
  0xcf   :  { %v339_v17 = vadd.f32 %v2150_v41, %v338_v13 }
  0xd0   :  { %v325_v42 = vpop.f32.mrf.mxu1  ;;  %v353_v35 = vpop.f32.mrf.mxu3 }
  0xd1   :  { %v326_v44 = vadd.f32 %v2150_v41, %v325_v42  ;;  %v354_v42 = vadd.f32 %v2150_v41, %v353_v35 }
  0xd3   :  { %v2157_v46 = vpack.c.bf16 %v326_v44, %v324_v43 }
  0xd5   :  { %v1601_v56 = vunpack.c.l.bf16 %v2157_v46 }
  0xd6   :  { %v340_v19 = vpop.f32.mrf.mxu2 }
  0xd7   :  { %v341_v20 = vadd.f32 %v2150_v41, %v340_v19 }
  0xd8   :  { %v328_v49 = vpop.f32.mrf.mxu1 }
  0xd9   :  { %v329_v51 = vadd.f32 %v2150_v41, %v328_v49  ;;  %v2223_v26 = vpack.c.bf16 %v341_v20, %v339_v17  ;;  %v355_v49 = vpop.f32.mrf.mxu3 }
  0xde   :  { %v343_v33 = vpop.f32.mrf.mxu2 }
  0xdf   :  { %v344_v37 = vadd.f32 %v2150_v41, %v343_v33 }
  0xe0   :  { %v330_v50 = vpop.f32.mrf.mxu1 }
  0xe1   :  { %v331_v52 = vadd.f32 %v2150_v41, %v330_v50  ;;  %v356_v50 = vadd.f32 %v2150_v41, %v355_v49 }
  0xe3   :  { %v2178_v53 = vpack.c.bf16 %v331_v52, %v329_v51  ;;  %v2233_v52 = vpack.c.bf16 %v356_v50, %v354_v42 }
  0xe5   :  { %v1610_v35 = vunpack.c.l.bf16 %v2178_v53  ;;  %v1611_v42 = vunpack.c.h.bf16 %v2178_v53 }
  0xe6   :  { %v345_v43 = vpop.f32.mrf.mxu2 }
  0xe7   :  { %v346_v44 = vadd.f32 %v2150_v41, %v345_v43 }
  0xe8   :  { %v451_v57 = vpop.f32.mrf.mxu1 }
  0xe9   :  { %v456_v59 = vadd.f32 %v1592_v58, %v451_v57  ;;  %v2231_v51 = vpack.c.bf16 %v346_v44, %v344_v37  ;;  %v583_v57 = vpop.f32.mrf.mxu3 }
  0xeb   :  { %1714 = vtanh.f32 %v456_v59 }
  0xf0   :  { %v453_v61 = vpop.f32.mrf.mxu1 }
  0xf1   :  { %v457_v62 = vadd.f32 %v1593_v60, %v453_v61  ;;  %v1715_v63 = vpop.eup %1714  ;;  %v1602_v61 = vunpack.c.h.bf16 %v2157_v46  ;;  %v585_v3 = vpop.f32.mrf.mxu3 }
  0xf3   :  { %1716 = vtanh.f32 %v457_v62 }
  0xf9   :  { %v1717_v0 = vpop.eup %1716 }
  0xfa   :  { %v460_v1 = vpack.c.bf16 %v1717_v0, %v1715_v63 }
  0xfc   :  { %520 = vmatmul.bf16.vlgmr.msrb.gmra.mxu2 %v460_v1  ;;  %608 = vmatmul.bf16.vlgmr.msra.gmra.mxu1 %v460_v1 }
  0xfd   :  { %684 = vmatpush.bf16.msrb.mxu2 %v2103_v21  ;;  %730 = vmatpush.bf16.msra.mxu1 %v2054_v2 }
 0x101   :  { %685 = vmatpush.bf16.msrb.mxu2 %v2107_v23  ;;  %731 = vmatpush.bf16.msra.mxu1 %v2057_v4 }
 0x105   :  { %686 = vmatpush.bf16.msrb.mxu2 %v2114_v27  ;;  %732 = vmatpush.bf16.msra.mxu1 %v2060_v6 }
 0x109   :  { %687 = vmatpush.bf16.msrb.mxu2 %v2120_v29  ;;  %733 = vmatpush.bf16.msra.mxu1 %v2063_v8 }
 0x10d   :  { %688 = vmatpush.bf16.msrb.mxu2 %v2131_v34  ;;  %734 = vmatpush.bf16.msra.mxu1 %v2066_v10 }
 0x111   :  { %689 = vmatpush.bf16.msrb.mxu2 %v2140_v39  ;;  %735 = vmatpush.bf16.msra.mxu1 %v2069_v12 }
 0x115   :  { %690 = vmatpush.bf16.msrb.mxu2 %v2159_v47  ;;  %736 = vmatpush.bf16.msra.mxu1 %v2073_v15 }
 0x119   :  { %691 = vmatpush.bf16.msrb.mxu2 %v2164_v48  ;;  %737 = vmatpush.bf16.msra.mxu1 %v2077_v16 }
 0x179   :  { %v609_v54 = vpop.f32.mrf.mxu1 }
 0x17a   :  { %v614_v59 = vadd.f32 %v1601_v56, %v609_v54 }
 0x17c   :  { %1718 = vtanh.f32 %v614_v59 }
 0x17f   :  { %v521_v58 = vpop.f32.mrf.mxu2 }
 0x180   :  { %v522_v60 = vadd.f32 %v2238_v55, %v521_v58 }
 0x181   :  { %v611_v41 = vpop.f32.mrf.mxu1 }
 0x182   :  { %v615_v62 = vadd.f32 %v1602_v61, %v611_v41  ;;  %v588_v63 = vadd.f32 %v583_v57, %v522_v60  ;;  %v1719_v5 = vpop.eup %1718 }
 0x184   :  { %1720 = vtanh.f32 %v615_v62 }
 0x185   :  { %1722 = vtanh.f32 %v588_v63 }
 0x187   :  { %v523_v0 = vpop.f32.mrf.mxu2 }
 0x188   :  { %v524_v1 = vadd.f32 %v2238_v55, %v523_v0 }
 0x18a   :  { %v589_v7 = vadd.f32 %v585_v3, %v524_v1  ;;  %v1721_v9 = vpop.eup %1720 }
 0x18b   :  { %v618_v13 = vpack.c.bf16 %v1721_v9, %v1719_v5  ;;  %v1723_v14 = vpop.eup %1722 }
 0x18c   :  { %1724 = vtanh.f32 %v589_v7  ;;  %v592_v46 = vpack.c.bf16 %v1723_v14, %v1723_v14 }
 0x18d   :  { %627 = vmatmul.bf16.vlgmr.msra.gmra.mxu2 %v618_v13  ;;  %673 = vmatmul.bf16.vlgmr.msrb.gmra.mxu1 %v618_v13 }
 0x18e   :  { %749 = vmatpush.bf16.msra.mxu2 %v2103_v21  ;;  %814 = vmatpush.bf16.msrb.mxu1 %v2103_v21  ;;  %v635_v20 = vunpack.c.l.b16 %v592_v46 }
 0x192   :  { %v1725_v17 = vpop.eup %1724  ;;  %750 = vmatpush.bf16.msra.mxu2 %v2107_v23  ;;  %815 = vmatpush.bf16.msrb.mxu1 %v2107_v23 }
 0x193   :  { %v1597_v18 = vpack.c.bf16 %v1725_v17, %v1723_v14  ;;  %v593_v19 = vpack.c.bf16 %v1725_v17, %v1725_v17  ;;  %v1619_v14 = vunpack.c.l.bf16 %v2217_v11  ;;  %v1620_v17 = vunpack.c.h.bf16 %v2217_v11 }
 0x195   :  { %1598 = vst [vmem:[#allocation2 + $0x30] sm:$0xff] %v1597_v18   ;;  %v636_v22 = vunpack.c.l.b16 %v593_v19 }
 0x196   :  { %751 = vmatpush.bf16.msra.mxu2 %v2114_v27  ;;  %816 = vmatpush.bf16.msrb.mxu1 %v2114_v27 }
 0x197   :  { %v637_v24 = vpack.c.b16 %v636_v22, %v635_v20 }
 0x199   :  { %647 = vmatmul.bf16.vlgmr.msra.gmra.mxu3 %v637_v24 }
 0x19a   :  { %769 = vmatpush.bf16.msra.mxu3 %v2109_v25  ;;  %752 = vmatpush.bf16.msra.mxu2 %v2120_v29 }
 0x19b   :  { %817 = vmatpush.bf16.msrb.mxu1 %v2120_v29 }
 0x19e   :  { %770 = vmatpush.bf16.msra.mxu3 %v2116_v28  ;;  %753 = vmatpush.bf16.msra.mxu2 %v2131_v34 }
 0x19f   :  { %818 = vmatpush.bf16.msrb.mxu1 %v2131_v34 }
 0x1a2   :  { %771 = vmatpush.bf16.msra.mxu3 %v2122_v30  ;;  %754 = vmatpush.bf16.msra.mxu2 %v2140_v39 }
 0x1a3   :  { %819 = vmatpush.bf16.msrb.mxu1 %v2140_v39 }
 0x1a6   :  { %772 = vmatpush.bf16.msra.mxu3 %v2128_v32  ;;  %755 = vmatpush.bf16.msra.mxu2 %v2159_v47 }
 0x1a7   :  { %820 = vmatpush.bf16.msrb.mxu1 %v2159_v47 }
 0x1aa   :  { %773 = vmatpush.bf16.msra.mxu3 %v2133_v36  ;;  %756 = vmatpush.bf16.msra.mxu2 %v2164_v48 }
 0x1ab   :  { %821 = vmatpush.bf16.msrb.mxu1 %v2164_v48 }
 0x1ae   :  { %774 = vmatpush.bf16.msra.mxu3 %v2138_v38 }
 0x1b2   :  { %775 = vmatpush.bf16.msra.mxu3 %v2143_v40 }
 0x1b6   :  { %776 = vmatpush.bf16.msra.mxu3 %v2155_v45 }
 0x20a   :  { %v674_v33 = vpop.f32.mrf.mxu1 }
 0x20b   :  { %v679_v37 = vadd.f32 %v1610_v35, %v674_v33 }
 0x20d   :  { %1726 = vtanh.f32 %v679_v37 }
 0x210   :  { %v628_v49 = vpop.f32.mrf.mxu2 }
 0x211   :  { %v629_v57 = vadd.f32 %v2238_v55, %v628_v49 }
 0x212   :  { %v676_v43 = vpop.f32.mrf.mxu1 }
 0x213   :  { %v680_v44 = vadd.f32 %v1611_v42, %v676_v43  ;;  %v1727_v50 = vpop.eup %1726 }
 0x215   :  { %1728 = vtanh.f32 %v680_v44 }
 0x218   :  { %v630_v60 = vpop.f32.mrf.mxu2 }
 0x219   :  { %v631_v53 = vadd.f32 %v2238_v55, %v630_v60 }
 0x21b   :  { %v1729_v54 = vpop.eup %1728 }
 0x21c   :  { %v648_v56 = vpop.f32.mrf.mxu3  ;;  %v683_v58 = vpack.c.bf16 %v1729_v54, %v1727_v50 }
 0x21d   :  { %v653_v59 = vadd.f32 %v648_v56, %v629_v57 }
 0x21e   :  { %692 = vmatmul.bf16.vlgmr.msrb.gmra.mxu2 %v683_v58  ;;  %738 = vmatmul.bf16.vlgmr.msra.gmra.mxu1 %v683_v58 }
 0x21f   :  { %834 = vmatpush.bf16.msrb.mxu2 %v2109_v25  ;;  %899 = vmatpush.bf16.msra.mxu1 %v2109_v25  ;;  %1730 = vtanh.f32 %v653_v59 }
 0x223   :  { %835 = vmatpush.bf16.msrb.mxu2 %v2116_v28  ;;  %900 = vmatpush.bf16.msra.mxu1 %v2116_v28 }
 0x224   :  { %v650_v61 = vpop.f32.mrf.mxu3 }
 0x225   :  { %v654_v41 = vadd.f32 %v650_v61, %v631_v53  ;;  %v1731_v62 = vpop.eup %1730 }
 0x226   :  { %v657_v63 = vpack.c.bf16 %v1731_v62, %v1731_v62 }
 0x227   :  { %1732 = vtanh.f32 %v654_v41  ;;  %836 = vmatpush.bf16.msrb.mxu2 %v2122_v30  ;;  %901 = vmatpush.bf16.msra.mxu1 %v2122_v30  ;;  %v1628_v41 = vunpack.c.l.bf16 %v2223_v26 }
 0x228   :  { %v700_v5 = vunpack.c.l.b16 %v657_v63  ;;  %v1629_v63 = vunpack.c.h.bf16 %v2223_v26 }
 0x22b   :  { %837 = vmatpush.bf16.msrb.mxu2 %v2128_v32  ;;  %902 = vmatpush.bf16.msra.mxu1 %v2128_v32 }
 0x22d   :  { %v1733_v0 = vpop.eup %1732 }
 0x22e   :  { %v658_v1 = vpack.c.bf16 %v1733_v0, %v1733_v0  ;;  %v1606_v3 = vpack.c.bf16 %v1733_v0, %v1731_v62 }
 0x22f   :  { %838 = vmatpush.bf16.msrb.mxu2 %v2133_v36  ;;  %903 = vmatpush.bf16.msra.mxu1 %v2133_v36 }
 0x230   :  { %1670 = vst [vmem:[#allocation2] sm:$0xff] %v1606_v3   ;;  %v701_v7 = vunpack.c.l.b16 %v658_v1 }
 0x232   :  { %v702_v9 = vpack.c.b16 %v701_v7, %v700_v5 }
 0x233   :  { %839 = vmatpush.bf16.msrb.mxu2 %v2138_v38  ;;  %904 = vmatpush.bf16.msra.mxu1 %v2138_v38 }
 0x234   :  { %712 = vmatmul.bf16.vlgmr.msrb.gmra.mxu3 %v702_v9 }
 0x235   :  { %860 = vmatpush.bf16.msrb.mxu3 %v2054_v2 }
 0x237   :  { %840 = vmatpush.bf16.msrb.mxu2 %v2143_v40  ;;  %905 = vmatpush.bf16.msra.mxu1 %v2143_v40 }
 0x239   :  { %861 = vmatpush.bf16.msrb.mxu3 %v2057_v4 }
 0x23b   :  { %841 = vmatpush.bf16.msrb.mxu2 %v2155_v45  ;;  %906 = vmatpush.bf16.msra.mxu1 %v2155_v45 }
 0x23d   :  { %862 = vmatpush.bf16.msrb.mxu3 %v2060_v6 }
 0x241   :  { %863 = vmatpush.bf16.msrb.mxu3 %v2063_v8 }
 0x245   :  { %864 = vmatpush.bf16.msrb.mxu3 %v2066_v10 }
 0x249   :  { %865 = vmatpush.bf16.msrb.mxu3 %v2069_v12 }
 0x24d   :  { %866 = vmatpush.bf16.msrb.mxu3 %v2073_v15 }
 0x251   :  { %867 = vmatpush.bf16.msrb.mxu3 %v2077_v16 }
 0x29b   :  { %v739_v13 = vpop.f32.mrf.mxu1 }
 0x29c   :  { %v744_v46 = vadd.f32 %v1619_v14, %v739_v13 }
 0x29e   :  { %1734 = vtanh.f32 %v744_v46 }
 0x2a1   :  { %v693_v33 = vpop.f32.mrf.mxu2 }
 0x2a2   :  { %v694_v11 = vadd.f32 %v2238_v55, %v693_v33 }
 0x2a3   :  { %v741_v18 = vpop.f32.mrf.mxu1 }
 0x2a4   :  { %v745_v19 = vadd.f32 %v1620_v17, %v741_v18  ;;  %v1735_v20 = vpop.eup %1734 }
 0x2a6   :  { %1736 = vtanh.f32 %v745_v19 }
 0x2a9   :  { %v695_v42 = vpop.f32.mrf.mxu2 }
 0x2aa   :  { %v696_v43 = vadd.f32 %v2238_v55, %v695_v42 }
 0x2ac   :  { %v1737_v22 = vpop.eup %1736 }
 0x2ad   :  { %v748_v24 = vpack.c.bf16 %v1737_v22, %v1735_v20 }
 0x2af   :  { %757 = vmatmul.bf16.vlgmr.msra.gmra.mxu2 %v748_v24  ;;  %803 = vmatmul.bf16.vlgmr.msra.gmra.mxu0 %v748_v24 }
 0x2b0   :  { %925 = vmatpush.bf16.msra.mxu2 %v2054_v2  ;;  %964 = vmatpush.bf16.msra.mxu0 %v2109_v25 }
 0x2b4   :  { %926 = vmatpush.bf16.msra.mxu2 %v2057_v4  ;;  %965 = vmatpush.bf16.msra.mxu0 %v2116_v28 }
 0x2b7   :  { %v713_v35 = vpop.f32.mrf.mxu3 }
 0x2b8   :  { %927 = vmatpush.bf16.msra.mxu2 %v2060_v6  ;;  %966 = vmatpush.bf16.msra.mxu0 %v2122_v30  ;;  %v718_v37 = vadd.f32 %v713_v35, %v694_v11 }
 0x2ba   :  { %1738 = vtanh.f32 %v718_v37 }
 0x2bc   :  { %928 = vmatpush.bf16.msra.mxu2 %v2063_v8  ;;  %967 = vmatpush.bf16.msra.mxu0 %v2128_v32 }
 0x2bf   :  { %v715_v44 = vpop.f32.mrf.mxu3 }
 0x2c0   :  { %v719_v49 = vadd.f32 %v715_v44, %v696_v43  ;;  %929 = vmatpush.bf16.msra.mxu2 %v2066_v10  ;;  %968 = vmatpush.bf16.msra.mxu0 %v2133_v36  ;;  %v1739_v50 = vpop.eup %1738  ;;  %v1646_v44 = vunpack.c.l.bf16 %v2225_v31 }
 0x2c1   :  { %v722_v54 = vpack.c.bf16 %v1739_v50, %v1739_v50 }
 0x2c2   :  { %1740 = vtanh.f32 %v719_v49 }
 0x2c3   :  { %v765_v59 = vunpack.c.l.b16 %v722_v54 }
 0x2c4   :  { %930 = vmatpush.bf16.msra.mxu2 %v2069_v12  ;;  %969 = vmatpush.bf16.msra.mxu0 %v2138_v38 }
 0x2c8   :  { %v1741_v56 = vpop.eup %1740  ;;  %931 = vmatpush.bf16.msra.mxu2 %v2073_v15  ;;  %970 = vmatpush.bf16.msra.mxu0 %v2143_v40 }
 0x2c9   :  { %v723_v57 = vpack.c.bf16 %v1741_v56, %v1741_v56  ;;  %v1615_v58 = vpack.c.bf16 %v1741_v56, %v1739_v50  ;;  %v1647_v50 = vunpack.c.h.bf16 %v2225_v31  ;;  %v1544_v31 = vld [vmem:[#allocation12 + $0x10] sm:$0xff] }
 0x2cb   :  { %1672 = vst [vmem:[#allocation2 + $0x18] sm:$0xff] %v1615_v58   ;;  %v766_v60 = vunpack.c.l.b16 %v723_v57  ;;  %v1549_v57 = vld [vmem:[#allocation12 + $0x38] sm:$0xff] }
 0x2cc   :  { %932 = vmatpush.bf16.msra.mxu2 %v2077_v16  ;;  %971 = vmatpush.bf16.msra.mxu0 %v2155_v45 }
 0x2cd   :  { %v767_v53 = vpack.c.b16 %v766_v60, %v765_v59 }
 0x2cf   :  { %777 = vmatmul.bf16.vlgmr.msra.gmra.mxu3 %v767_v53  ;;  %v1548_v53 = vld [vmem:[#allocation12 + $0x30] sm:$0xff] }
 0x2d0   :  { %944 = vmatpush.bf16.msra.mxu3 %v2103_v21 }
 0x2d4   :  { %945 = vmatpush.bf16.msra.mxu3 %v2107_v23 }
 0x2d8   :  { %946 = vmatpush.bf16.msra.mxu3 %v2114_v27 }
 0x2dc   :  { %947 = vmatpush.bf16.msra.mxu3 %v2120_v29 }
 0x2e0   :  { %948 = vmatpush.bf16.msra.mxu3 %v2131_v34 }
 0x2e4   :  { %949 = vmatpush.bf16.msra.mxu3 %v2140_v39 }
 0x2e8   :  { %950 = vmatpush.bf16.msra.mxu3 %v2159_v47 }
 0x2ec   :  { %951 = vmatpush.bf16.msra.mxu3 %v2164_v48 }
 0x32c   :  { %v804_v61 = vpop.f32.mrf.mxu0 }
 0x32d   :  { %v809_v62 = vadd.f32 %v1628_v41, %v804_v61  ;;  %v1547_v61 = vld [vmem:[#allocation12 + $0x28] sm:$0xff]  ;;  %v1546_v41 = vld [vmem:[#allocation12 + $0x20] sm:$0xff] }
 0x32f   :  { %1742 = vtanh.f32 %v809_v62  ;;  %v1545_v62 = vld [vmem:[#allocation12 + $0x18] sm:$0xff] }
 0x332   :  { %v758_v26 = vpop.f32.mrf.mxu2 }
 0x334   :  { %v806_v0 = vpop.f32.mrf.mxu0 }
 0x335   :  { %v810_v1 = vadd.f32 %v1629_v63, %v806_v0  ;;  %v1743_v3 = vpop.eup %1742  ;;  %v1543_v0 = vld [vmem:[#allocation12 + $0x8] sm:$0xff] }
 0x337   :  { %1744 = vtanh.f32 %v810_v1 }
 0x33d   :  { %v1745_v5 = vpop.eup %1744 }
 0x33e   :  { %v813_v7 = vpack.c.bf16 %v1745_v5, %v1743_v3  ;;  %v1542_v5 = vld [vmem:[#allocation12] sm:$0xff] }
 0x340   :  { %822 = vmatmul.bf16.vlgmr.msrb.gmra.mxu1 %v813_v7  ;;  %868 = vmatmul.bf16.vlgmr.msrb.gmra.mxu3 %v813_v7 }
 0x341   :  { %990 = vmatpush.bf16.msrb.mxu1 %v2054_v2  ;;  %1029 = vmatpush.bf16.msrb.mxu3 %v2109_v25  ;;  %v759_v2 = vadd.f32 %v2238_v55, %v758_v26 }
 0x345   :  { %991 = vmatpush.bf16.msrb.mxu1 %v2057_v4  ;;  %1030 = vmatpush.bf16.msrb.mxu3 %v2116_v28  ;;  %v760_v4 = vpop.f32.mrf.mxu2 }
 0x349   :  { %992 = vmatpush.bf16.msrb.mxu1 %v2060_v6  ;;  %1031 = vmatpush.bf16.msrb.mxu3 %v2122_v30  ;;  %v761_v6 = vadd.f32 %v2238_v55, %v760_v4 }
 0x34d   :  { %993 = vmatpush.bf16.msrb.mxu1 %v2063_v8  ;;  %1032 = vmatpush.bf16.msrb.mxu3 %v2128_v32 }
 0x351   :  { %994 = vmatpush.bf16.msrb.mxu1 %v2066_v10  ;;  %1033 = vmatpush.bf16.msrb.mxu3 %v2133_v36 }
 0x352   :  { %v778_v9 = vpop.f32.mrf.mxu3 }
 0x353   :  { %v783_v25 = vadd.f32 %v778_v9, %v759_v2 }
 0x355   :  { %995 = vmatpush.bf16.msrb.mxu1 %v2069_v12  ;;  %1034 = vmatpush.bf16.msrb.mxu3 %v2138_v38  ;;  %1746 = vtanh.f32 %v783_v25 }
 0x359   :  { %996 = vmatpush.bf16.msrb.mxu1 %v2073_v15  ;;  %1035 = vmatpush.bf16.msrb.mxu3 %v2143_v40 }
 0x35a   :  { %v780_v28 = vpop.f32.mrf.mxu3 }
 0x35b   :  { %v784_v8 = vadd.f32 %v780_v28, %v761_v6  ;;  %v1747_v10 = vpop.eup %1746 }
 0x35c   :  { %v787_v30 = vpack.c.bf16 %v1747_v10, %v1747_v10 }
 0x35d   :  { %1748 = vtanh.f32 %v784_v8  ;;  %997 = vmatpush.bf16.msrb.mxu1 %v2077_v16  ;;  %1036 = vmatpush.bf16.msrb.mxu3 %v2155_v45  ;;  %v1637_v16 = vunpack.c.l.bf16 %v2231_v51 }
 0x35e   :  { %v830_v38 = vunpack.c.l.b16 %v787_v30 }
 0x363   :  { %v1749_v32 = vpop.eup %1748 }
 0x364   :  { %v788_v12 = vpack.c.bf16 %v1749_v32, %v1749_v32  ;;  %v1624_v36 = vpack.c.bf16 %v1749_v32, %v1747_v10 }
 0x366   :  { %1674 = vst [vmem:[#allocation2 + $0x10] sm:$0xff] %v1624_v36   ;;  %v831_v13 = vunpack.c.l.b16 %v788_v12  ;;  %v1534_v36 = vld [vmem:[#allocation2 + $0x30] sm:$0xff] }
 0x368   :  { %v832_v14 = vpack.c.b16 %v831_v13, %v830_v38  ;;  %v1535_v38 = vld [vmem:[#allocation2] sm:$0xff]  ;;  %v1536_v13 = vld [vmem:[#allocation2 + $0x18] sm:$0xff] }
 0x36a   :  { %842 = vmatmul.bf16.vlgmr.msrb.gmra.mxu2 %v832_v14 }
 0x36b   :  { %1009 = vmatpush.bf16.msrb.mxu2 %v2103_v21  ;;  %v1638_v21 = vunpack.c.h.bf16 %v2231_v51 }
 0x36d   :  { %v1537_v14 = vld [vmem:[#allocation2 + $0x10] sm:$0xff] }
 0x36f   :  { %1010 = vmatpush.bf16.msrb.mxu2 %v2107_v23 }
 0x373   :  { %1011 = vmatpush.bf16.msrb.mxu2 %v2114_v27 }
 0x377   :  { %1012 = vmatpush.bf16.msrb.mxu2 %v2120_v29 }
 0x37b   :  { %1013 = vmatpush.bf16.msrb.mxu2 %v2131_v34 }
 0x37f   :  { %1014 = vmatpush.bf16.msrb.mxu2 %v2140_v39 }
 0x383   :  { %1015 = vmatpush.bf16.msrb.mxu2 %v2159_v47 }
 0x387   :  { %1016 = vmatpush.bf16.msrb.mxu2 %v2164_v48 }
 0x3bd   :  { %v823_v34 = vpop.f32.mrf.mxu1 }
 0x3be   :  { %v824_v47 = vadd.f32 %v2238_v55, %v823_v34 }
 0x3c3   :  { %v869_v15 = vpop.f32.mrf.mxu3 }
 0x3c4   :  { %v874_v40 = vadd.f32 %v1637_v16, %v869_v15 }
 0x3c5   :  { %v825_v17 = vpop.f32.mrf.mxu1 }
 0x3c6   :  { %1750 = vtanh.f32 %v874_v40  ;;  %v826_v18 = vadd.f32 %v2238_v55, %v825_v17  ;;  %v1655_v40 = vunpack.c.l.bf16 %v2233_v52 }
 0x3cb   :  { %v871_v45 = vpop.f32.mrf.mxu3 }
 0x3cc   :  { %v875_v23 = vadd.f32 %v1638_v21, %v871_v45  ;;  %v1751_v27 = vpop.eup %1750  ;;  %v1656_v45 = vunpack.c.h.bf16 %v2233_v52 }
 0x3ce   :  { %1752 = vtanh.f32 %v875_v23 }
 0x3d4   :  { %v1753_v29 = vpop.eup %1752 }
 0x3d5   :  { %v878_v46 = vpack.c.bf16 %v1753_v29, %v1751_v27 }
 0x3d7   :  { %887 = vmatmul.bf16.vlgmr.msrb.gmra.mxu0 %v878_v46  ;;  %933 = vmatmul.bf16.vlgmr.msra.gmra.mxu2 %v878_v46 }
 0x3d8   :  { %1183 = vmatpush.bf16.msrb.mxu0 %v1549_v57 }
 0x3dc   :  { %1184 = vmatpush.bf16.msrb.mxu0 %v1548_v53 }
 0x3e0   :  { %1185 = vmatpush.bf16.msrb.mxu0 %v1547_v61 }
 0x3e4   :  { %1186 = vmatpush.bf16.msrb.mxu0 %v1546_v41 }
 0x3e8   :  { %1187 = vmatpush.bf16.msrb.mxu0 %v1545_v62 }
 0x3ec   :  { %1188 = vmatpush.bf16.msrb.mxu0 %v1544_v31 }
 0x3ed   :  { %v843_v39 = vpop.f32.mrf.mxu2 }
 0x3ee   :  { %v848_v48 = vadd.f32 %v843_v39, %v824_v47 }
 0x3f0   :  { %1754 = vtanh.f32 %v848_v48  ;;  %1189 = vmatpush.bf16.msrb.mxu0 %v1543_v0 }
 0x3f4   :  { %1190 = vmatpush.bf16.msrb.mxu0 %v1542_v5 }
 0x3f5   :  { %v845_v19 = vpop.f32.mrf.mxu2 }
 0x3f6   :  { %v849_v51 = vadd.f32 %v845_v19, %v826_v18  ;;  %v1755_v20 = vpop.eup %1754 }
 0x3f7   :  { %v852_v22 = vpack.c.bf16 %v1755_v20, %v1755_v20 }
 0x3f8   :  { %1756 = vtanh.f32 %v849_v51 }
 0x3f9   :  { %v895_v11 = vunpack.c.l.b16 %v852_v22 }
 0x3fe   :  { %v1757_v24 = vpop.eup %1756 }
 0x3ff   :  { %v853_v33 = vpack.c.bf16 %v1757_v24, %v1757_v24  ;;  %v1633_v35 = vpack.c.bf16 %v1757_v24, %v1755_v20  ;;  %v2367_v24 = vld [vmem:[%s2398_s8] ss:$0 sm:$0xff]  ;;  %s1965_s8 = smov [#allocation14]  }
 0x400   :  { %s1252_s18 = sshll.u32 %s1965_s8, 4  ;;  %s1253_s18 = int_to_ptr.vmem [resolvable:$true] %s1252_s18 }
 0x401   :  { %1676 = vst [vmem:[#allocation2 + $0x8] sm:$0xff] %v1633_v35   ;;  %v896_v37 = vunpack.c.l.b16 %v853_v33 }
 0x403   :  { %v897_v42 = vpack.c.b16 %v896_v37, %v895_v11 }
 0x405   :  { %907 = vmatmul.bf16.vlgmr.msra.gmra.mxu1 %v897_v42 }
 0x408   :  { %v1538_v15 = vld [vmem:[#allocation2 + $0x8] sm:$0xff] }
 0x454   :  { %v888_v63 = vpop.f32.mrf.mxu0 }
 0x455   :  { %v889_v3 = vadd.f32 %v2238_v55, %v888_v63 }
 0x45a   :  { %v934_v43 = vpop.f32.mrf.mxu2 }
 0x45b   :  { %v939_v49 = vadd.f32 %v1646_v44, %v934_v43 }
 0x45c   :  { %v890_v26 = vpop.f32.mrf.mxu0 }
 0x45d   :  { %1758 = vtanh.f32 %v939_v49  ;;  %v891_v9 = vadd.f32 %v2238_v55, %v890_v26 }
 0x462   :  { %v936_v54 = vpop.f32.mrf.mxu2 }
 0x463   :  { %v940_v56 = vadd.f32 %v1647_v50, %v936_v54  ;;  %v1759_v58 = vpop.eup %1758 }
 0x465   :  { %1760 = vtanh.f32 %v940_v56 }
 0x46b   :  { %v1761_v59 = vpop.eup %1760 }
 0x46c   :  { %v943_v60 = vpack.c.bf16 %v1761_v59, %v1759_v58 }
 0x46e   :  { %952 = vmatmul.bf16.vlgmr.msra.gmra.mxu3 %v943_v60  ;;  %998 = vmatmul.bf16.vlgmr.msrb.gmra.mxu1 %v943_v60 }
 0x482   :  { %v908_v1 = vpop.f32.mrf.mxu1 }
 0x483   :  { %v913_v7 = vadd.f32 %v908_v1, %v889_v3 }
 0x485   :  { %1762 = vtanh.f32 %v913_v7 }
 0x48a   :  { %v910_v2 = vpop.f32.mrf.mxu1 }
 0x48b   :  { %v914_v25 = vadd.f32 %v910_v2, %v891_v9  ;;  %v1763_v4 = vpop.eup %1762 }
 0x48c   :  { %v917_v6 = vpack.c.bf16 %v1763_v4, %v1763_v4 }
 0x48d   :  { %1764 = vtanh.f32 %v914_v25 }
 0x48e   :  { %v960_v30 = vunpack.c.l.b16 %v917_v6 }
 0x493   :  { %v1765_v28 = vpop.eup %1764 }
 0x494   :  { %v918_v8 = vpack.c.bf16 %v1765_v28, %v1765_v28  ;;  %v1642_v10 = vpack.c.bf16 %v1765_v28, %v1763_v4 }
 0x496   :  { %1678 = vst [vmem:[#allocation2 + $0x20] sm:$0xff] %v1642_v10   ;;  %v961_v32 = vunpack.c.l.b16 %v918_v8 }
 0x498   :  { %v962_v12 = vpack.c.b16 %v961_v32, %v960_v30 }
 0x49a   :  { %972 = vmatmul.bf16.vlgmr.msra.gmra.mxu0 %v962_v12 }
 0x49d   :  { %v1539_v29 = vld [vmem:[#allocation2 + $0x20] sm:$0xff] }
 0x4aa   :  { %1191 = vmatmul.bf16.vlgmr.msrb.gmra.mxu0 %v1534_v36 }
 0x4ba   :  { %1196 = vmatmul.bf16.gmra.mxu0 %v1535_v38 }
 0x4ca   :  { %1201 = vmatmul.bf16.gmra.mxu0 %v1536_v13 }
 0x4da   :  { %1206 = vmatmul.bf16.gmra.mxu0 %v1537_v14 }
 0x4ea   :  { %1211 = vmatmul.bf16.gmra.mxu0 %v1538_v15 }
 0x4eb   :  { %v999_v16 = vpop.f32.mrf.mxu1 }
 0x4ec   :  { %v1004_v21 = vadd.f32 %v1655_v40, %v999_v16 }
 0x4ee   :  { %1766 = vtanh.f32 %v1004_v21 }
 0x4f1   :  { %v953_v47 = vpop.f32.mrf.mxu3 }
 0x4f2   :  { %v954_v17 = vadd.f32 %v2238_v55, %v953_v47 }
 0x4f3   :  { %v1001_v23 = vpop.f32.mrf.mxu1 }
 0x4f4   :  { %v1005_v27 = vadd.f32 %v1656_v45, %v1001_v23  ;;  %v1767_v46 = vpop.eup %1766 }
 0x4f6   :  { %1768 = vtanh.f32 %v1005_v27 }
 0x4f9   :  { %v955_v19 = vpop.f32.mrf.mxu3 }
 0x4fa   :  { %1216 = vmatmul.bf16.gmra.mxu0 %v1539_v29  ;;  %v956_v51 = vadd.f32 %v2238_v55, %v955_v19 }
 0x4fc   :  { %v1769_v34 = vpop.eup %1768 }
 0x4fd   :  { %v1008_v39 = vpack.c.bf16 %v1769_v34, %v1767_v46 }
 0x4ff   :  { %1017 = vmatmul.bf16.vlgmr.msrb.gmra.mxu2 %v1008_v39 }
 0x517   :  { %v973_v48 = vpop.f32.mrf.mxu0 }
 0x518   :  { %v978_v18 = vadd.f32 %v973_v48, %v954_v17 }
 0x51a   :  { %1770 = vtanh.f32 %v978_v18 }
 0x51f   :  { %v975_v52 = vpop.f32.mrf.mxu0 }
 0x520   :  { %v979_v20 = vadd.f32 %v975_v52, %v956_v51  ;;  %v1771_v22 = vpop.eup %1770 }
 0x521   :  { %v982_v33 = vpack.c.bf16 %v1771_v22, %v1771_v22 }
 0x522   :  { %1772 = vtanh.f32 %v979_v20 }
 0x523   :  { %v1025_v44 = vunpack.c.l.b16 %v982_v33 }
 0x527   :  { %v1192_v35 = vpop.f32.mrf.mxu0 }
 0x528   :  { %v1773_v11 = vpop.eup %1772  ;;  %v1193_v37 = vadd.f32 %v2367_v24, %v1192_v35 }
 0x529   :  { %v983_v42 = vpack.c.bf16 %v1773_v11, %v1773_v11  ;;  %v1651_v43 = vpack.c.bf16 %v1773_v11, %v1771_v22 }
 0x52a   :  { %1232 = vst [vmem:[#allocation14] sm:$0xff] %v1193_v37 }
 0x52b   :  { %1680 = vst [vmem:[#allocation2 + $0x28] sm:$0xff] %v1651_v43   ;;  %v1026_v49 = vunpack.c.l.b16 %v983_v42 }
 0x52d   :  { %v1027_v50 = vpack.c.b16 %v1026_v49, %v1025_v44 }
 0x52f   :  { %1037 = vmatmul.bf16.vlgmr.msrb.gmra.mxu3 %v1027_v50  ;;  %v1194_v54 = vpop.f32.mrf.mxu0 }
 0x530   :  { %v1195_v56 = vadd.f32 %v2367_v24, %v1194_v54 }
 0x532   :  { %1233 = vst [vmem:[#allocation14 + $0x8] sm:$0xff] %v1195_v56  ;;  %v1540_v57 = vld [vmem:[#allocation2 + $0x28] sm:$0xff] }
 0x533   :  { %1221 = vmatmul.bf16.gmra.mxu0 %v1540_v57 }
 0x537   :  { %v1197_v58 = vpop.f32.mrf.mxu0 }
 0x538   :  { %v1198_v59 = vadd.f32 %v2367_v24, %v1197_v58 }
 0x53a   :  { %1234 = vst [vmem:[#allocation14 + $0x10] sm:$0xff] %v1198_v59 }
 0x53f   :  { %v1199_v60 = vpop.f32.mrf.mxu0 }
 0x540   :  { %v1200_v53 = vadd.f32 %v2367_v24, %v1199_v60 }
 0x542   :  { %1235 = vst [vmem:[#allocation14 + $0x18] sm:$0xff] %v1200_v53 }
 0x547   :  { %v1202_v61 = vpop.f32.mrf.mxu0 }
 0x548   :  { %v1203_v41 = vadd.f32 %v2367_v24, %v1202_v61 }
 0x54a   :  { %1236 = vst [vmem:[#allocation14 + $0x20] sm:$0xff] %v1203_v41 }
 0x54f   :  { %v1204_v62 = vpop.f32.mrf.mxu0 }
 0x550   :  { %v1205_v63 = vadd.f32 %v2367_v24, %v1204_v62 }
 0x552   :  { %1237 = vst [vmem:[#allocation14 + $0x28] sm:$0xff] %v1205_v63 }
 0x557   :  { %v1207_v31 = vpop.f32.mrf.mxu0 }
 0x558   :  { %v1208_v0 = vadd.f32 %v2367_v24, %v1207_v31 }
 0x55a   :  { %1238 = vst [vmem:[#allocation14 + $0x30] sm:$0xff] %v1208_v0 }
 0x55f   :  { %v1209_v1 = vpop.f32.mrf.mxu0 }
 0x560   :  { %v1210_v3 = vadd.f32 %v2367_v24, %v1209_v1 }
 0x562   :  { %1239 = vst [vmem:[#allocation14 + $0x38] sm:$0xff] %v1210_v3 }
 0x567   :  { %v1212_v5 = vpop.f32.mrf.mxu0 }
 0x568   :  { %v1213_v7 = vadd.f32 %v2367_v24, %v1212_v5 }
 0x56a   :  { %1240 = vst [vmem:[#allocation14 + $0x40] sm:$0xff] %v1213_v7 }
 0x56f   :  { %v1214_v26 = vpop.f32.mrf.mxu0 }
 0x570   :  { %v1215_v9 = vadd.f32 %v2367_v24, %v1214_v26 }
 0x572   :  { %1241 = vst [vmem:[#allocation14 + $0x48] sm:$0xff] %v1215_v9 }
 0x577   :  { %v1217_v2 = vpop.f32.mrf.mxu0 }
 0x578   :  { %v1218_v25 = vadd.f32 %v2367_v24, %v1217_v2 }
 0x57a   :  { %1242 = vst [vmem:[#allocation14 + $0x50] sm:$0xff] %v1218_v25 }
 0x57f   :  { %v1219_v4 = vpop.f32.mrf.mxu0 }
 0x580   :  { %v1220_v6 = vadd.f32 %v2367_v24, %v1219_v4 }
 0x582   :  { %1243 = vst [vmem:[#allocation14 + $0x58] sm:$0xff] %v1220_v6  ;;  %v1018_v28 = vpop.f32.mrf.mxu2 }
 0x583   :  { %v1019_v32 = vadd.f32 %v2238_v55, %v1018_v28 }
 0x58a   :  { %v1020_v12 = vpop.f32.mrf.mxu2 }
 0x58b   :  { %v1021_v38 = vadd.f32 %v2238_v55, %v1020_v12 }
 0x5b0   :  { %v1222_v8 = vpop.f32.mrf.mxu0 }
 0x5b1   :  { %v1223_v30 = vadd.f32 %v2367_v24, %v1222_v8 }
 0x5b2   :  { %v1038_v10 = vpop.f32.mrf.mxu3 }
 0x5b3   :  { %1244 = vst [vmem:[#allocation14 + $0x60] sm:$0xff] %v1223_v30  ;;  %v1043_v36 = vadd.f32 %v1038_v10, %v1019_v32 }
 0x5b5   :  { %1774 = vtanh.f32 %v1043_v36 }
 0x5b8   :  { %v1224_v13 = vpop.f32.mrf.mxu0 }
 0x5b9   :  { %v1225_v15 = vadd.f32 %v2367_v24, %v1224_v13 }
 0x5ba   :  { %v1040_v14 = vpop.f32.mrf.mxu3 }
 0x5bb   :  { %v1044_v16 = vadd.f32 %v1040_v14, %v1021_v38  ;;  %1245 = vst [vmem:[#allocation14 + $0x68] sm:$0xff] %v1225_v15  ;;  %v1775_v40 = vpop.eup %1774 }
 0x5bd   :  { %1776 = vtanh.f32 %v1044_v16 }
 0x5c3   :  { %v1777_v21 = vpop.eup %1776 }
 0x5c4   :  { %v1660_v45 = vpack.c.bf16 %v1777_v21, %v1775_v40 }
 0x5c6   :  { %1682 = vst [vmem:[#allocation2 + $0x38] sm:$0xff] %v1660_v45  }
 0x5cd   :  { %v1541_v23 = vld [vmem:[#allocation2 + $0x38] sm:$0xff] }
 0x5ce   :  { %1226 = vmatmul.bf16.gmra.mxu0 %v1541_v23 }
 0x64b   :  { %v1227_v27 = vpop.f32.mrf.mxu0 }
 0x64c   :  { %v1228_v29 = vadd.f32 %v2367_v24, %v1227_v27 }
 0x64e   :  { %1246 = vst [vmem:[#allocation14 + $0x70] sm:$0xff] %v1228_v29 }
 0x653   :  { %v1229_v55 = vpop.f32.mrf.mxu0 }
 0x654   :  { %v1230_v46 = vadd.f32 %v2367_v24, %v1229_v55 }
 0x656   :  { %1247 = vst [vmem:[#allocation14 + $0x78] sm:$0xff] %v1230_v46 }
 0x657   :  { %1260 = dma.vmem_to_hbm [thread:$0]  %s1253_s18, 2048, %s1255_s21, [#allocation5], %s1966_s22, %s1966_s22, %s1967_s1  }
 0x658   :  { %1954 = dma.done.wait [#allocation5], 2048  }
 0x659   :  { %1955 = vsyncadd [#allocation5], 4294965248 }
 0x65a   :  { %1265 = vsyncpa [#allocation4], 1 }
 0x65b   :  { %1266 = vsyncpa [#allocation7], 1 }
 0x65c   :  { %1267 = vsyncpa [#allocation10], 1 }
 0x65d   :  { %1268 = vsyncpa [#allocation13], 1 }
 0x65e   :  { %1269 = vsyncpa [#allocation5], 1 }

</bundles_post_ra>
